<compile_context>
chip_gen: v7x
topology: tpu7x:2x2x1
jax: 0.10.0
libtpu: 0.0.40
codegen_flags: <defaults>
</compile_context>

<pallas_src>
import functools

import jax
import jax.numpy as jnp
from jax.experimental import pallas as pl
from jax.experimental.pallas import tpu as pltpu

_COMPUTE_DTYPE = jnp.bfloat16          # MXU operand dtype (f32 accumulation)


def _round_up(x, m):
    return ((x + m - 1) // m) * m


# --------------------------------------------------------------------------
# Hardware-aware tile / VMEM policy
# --------------------------------------------------------------------------
def _vmem_capacity_bytes():
    try:
        info = pltpu.get_tpu_info()
        cap = getattr(info, "vmem_capacity_bytes", None)
        if cap:
            return int(cap)
    except Exception:
        pass
    return 128 * 1024 * 1024


@functools.lru_cache(maxsize=1)
def _hw_caps():
    cap = _vmem_capacity_bytes()
    if cap <= 64 * 1024 * 1024:
        # v7x-class: 64 MiB physical VMEM per TC -> conservative tiles, leave
        # headroom for compiler-internal scratch / semaphores.
        tm_max, tn_cap = 256, 512
        vmem_limit = cap - (12 << 20)
    else:
        # v5e / v6e: 128 MiB VMEM -> bigger tiles, fewer grid steps, larger DMAs.
        tm_max, tn_cap = 512, 1024
        vmem_limit = min(cap - (16 << 20), 100 << 20)
    return tm_max, tn_cap, max(vmem_limit, 32 << 20)


def _choose_tn(hid_pad, cap):
    # Largest multiple-of-128 divisor of hid_pad that fits under `cap`
    # (hid_pad is always a multiple of 128, so 128 is a guaranteed fallback).
    if hid_pad <= cap:
        return hid_pad
    tn = (cap // 128) * 128
    while tn > 128 and hid_pad % tn != 0:
        tn -= 128
    return max(128, tn)


def _footprint(tm, tn, hid, d_ins, out_bytes):
    # Per-step VMEM footprint estimate of the (fused) kernel.
    total = 0
    for d_in in d_ins:
        total += 2 * tm * d_in * 2        # x tile, double-buffered bf16
        total += d_in * hid * 2           # W1, Buffered(1) bf16
        total += hid * 4                  # b1, Buffered(1) f32
        total += 2 * hid * tn * 2         # W2 N-tile, double-buffered bf16
        total += 2 * tn * 4               # b2 N-tile, double-buffered f32
        total += 2 * tm * tn * out_bytes  # output tile, double-buffered
        total += tm * hid * 2             # ReLU hidden scratch bf16
    return total


def _select_tiles(m, hid_pad, d_ins, out_bytes):
    tm_max, tn_cap, vmem_limit = _hw_caps()
    # Single token tile whenever possible: extra token tiles re-stream W2.
    tm = max(8, min(tm_max, _round_up(m, 8)))
    tn = _choose_tn(hid_pad, tn_cap)
    budget = int(vmem_limit * 0.9)
    while _footprint(tm, tn, hid_pad, d_ins, out_bytes) > budget:
        if tn > 128:
            tn = _choose_tn(hid_pad, max(128, tn // 2))
        elif tm > 8:
            tm = max(8, _round_up(tm // 2, 8))
        else:
            break
    return tm, tn, vmem_limit


# --------------------------------------------------------------------------
# Kernels
# --------------------------------------------------------------------------
def _tile_mlp(x_ref, w1_ref, b1_ref, w2_ref, b2_ref, o_ref, h_ref, first_n):
    # First N step of each token tile: Linear -> ReLU cached into VMEM scratch.
    @pl.when(first_n)
    def _():
        h = jnp.dot(x_ref[...], w1_ref[...], preferred_element_type=jnp.float32)
        h = jnp.maximum(h + b1_ref[...], 0.0)
        h_ref[...] = h.astype(h_ref.dtype)

    # Every N step: second Linear over the current N tile of W2.
    y = jnp.dot(h_ref[...], w2_ref[...], preferred_element_type=jnp.float32)
    o_ref[...] = (y + b2_ref[...]).astype(o_ref.dtype)


def _fused_kernel(xs_ref, sw1_ref, sb1_ref, sw2_ref, sb2_ref,
                  xq_ref, qw1_ref, qb1_ref, qw2_ref, qb2_ref,
                  os_ref, oq_ref, hs_ref, hq_ref):
    first_n = pl.program_id(1) == 0
    _tile_mlp(xs_ref, sw1_ref, sb1_ref, sw2_ref, sb2_ref, os_ref, hs_ref, first_n)
    _tile_mlp(xq_ref, qw1_ref, qb1_ref, qw2_ref, qb2_ref, oq_ref, hq_ref, first_n)


def _single_kernel(x_ref, w1_ref, b1_ref, w2_ref, b2_ref, o_ref, h_ref):
    _tile_mlp(x_ref, w1_ref, b1_ref, w2_ref, b2_ref, o_ref, h_ref,
              pl.program_id(1) == 0)


# --------------------------------------------------------------------------
# Specs / wrappers
# --------------------------------------------------------------------------
def _mlp_specs(d_in, hid, tm, tn):
    resident = pl.Buffered(1)   # grid-invariant inputs: single buffer, loaded once
    in_specs = [
        pl.BlockSpec((tm, d_in), lambda i, j: (i, 0)),                          # x tile
        pl.BlockSpec((d_in, hid), lambda i, j: (0, 0), pipeline_mode=resident),  # W1
        pl.BlockSpec((1, hid), lambda i, j: (0, 0), pipeline_mode=resident),     # b1
        pl.BlockSpec((hid, tn), lambda i, j: (0, j)),                            # W2 N tile
        pl.BlockSpec((1, tn), lambda i, j: (0, j)),                              # b2 N tile
    ]
    out_spec = pl.BlockSpec((tm, tn), lambda i, j: (i, j))
    scratch = pltpu.VMEM((tm, hid), _COMPUTE_DTYPE)       # cached ReLU activations
    return in_specs, out_spec, scratch


def _pad_hidden(params, hid_pad):
    w1, b1, w2, b2 = params
    hid = w1.shape[1]
    if hid == hid_pad:
        return w1, b1, w2, b2
    ph = hid_pad - hid
    return (jnp.pad(w1, ((0, 0), (0, ph))),
            jnp.pad(b1, ((0, 0), (0, ph))),
            jnp.pad(w2, ((0, ph), (0, ph))),
            jnp.pad(b2, ((0, 0), (0, ph))))


@functools.partial(jax.jit, static_argnames=("out_dtype",))
def _mlp_pallas(x2d, w1, b1, w2, b2, *, out_dtype):
    m, d_in = x2d.shape
    hid = w1.shape[1]
    hid_pad = _round_up(hid, 128)
    w1, b1, w2, b2 = _pad_hidden((w1, b1, w2, b2), hid_pad)

    out_bytes = jnp.dtype(out_dtype).itemsize
    tm, tn, vmem_limit = _select_tiles(m, hid_pad, (d_in,), out_bytes)
    num_m, num_n = -(-m // tm), hid_pad // tn
    m_pad = num_m * tm
    x2d = jnp.pad(x2d, ((0, m_pad - m), (0, 0)))

    in_specs, out_spec, scratch = _mlp_specs(d_in, hid_pad, tm, tn)
    y = pl.pallas_call(
        _single_kernel,
        out_shape=jax.ShapeDtypeStruct((m_pad, hid_pad), out_dtype),
        grid_spec=pltpu.PrefetchScalarGridSpec(
            num_scalar_prefetch=0,
            grid=(num_m, num_n),
            in_specs=in_specs,
            out_specs=out_spec,
            scratch_shapes=[scratch]),
        compiler_params=pltpu.CompilerParams(
            dimension_semantics=("parallel", "arbitrary"),
            vmem_limit_bytes=vmem_limit),
    )(x2d, w1, b1, w2, b2)
    return y[:m, :hid]


@functools.partial(jax.jit, static_argnames=("out_dtype",))
def _fused_mlp_pallas(xs2d, s_params, xq2d, q_params, *, out_dtype):
    ms, ds_in = xs2d.shape
    mq, dq_in = xq2d.shape
    hid = s_params[0].shape[1]
    hid_pad = _round_up(hid, 128)
    sw1, sb1, sw2, sb2 = _pad_hidden(s_params, hid_pad)
    qw1, qb1, qw2, qb2 = _pad_hidden(q_params, hid_pad)

    m = max(ms, mq)
    out_bytes = jnp.dtype(out_dtype).itemsize
    tm, tn, vmem_limit = _select_tiles(m, hid_pad, (ds_in, dq_in), out_bytes)
    num_m, num_n = -(-m // tm), hid_pad // tn
    m_pad = num_m * tm
    xs2d = jnp.pad(xs2d, ((0, m_pad - ms), (0, 0)))
    xq2d = jnp.pad(xq2d, ((0, m_pad - mq), (0, 0)))

    s_specs, s_out, s_scratch = _mlp_specs(ds_in, hid_pad, tm, tn)
    q_specs, q_out, q_scratch = _mlp_specs(dq_in, hid_pad, tm, tn)
    ys, yq = pl.pallas_call(
        _fused_kernel,
        out_shape=(jax.ShapeDtypeStruct((m_pad, hid_pad), out_dtype),
                   jax.ShapeDtypeStruct((m_pad, hid_pad), out_dtype)),
        grid_spec=pltpu.PrefetchScalarGridSpec(
            num_scalar_prefetch=0,
            grid=(num_m, num_n),
            in_specs=s_specs + q_specs,
            out_specs=[s_out, q_out],
            scratch_shapes=[s_scratch, q_scratch]),
        compiler_params=pltpu.CompilerParams(
            dimension_semantics=("parallel", "arbitrary"),
            vmem_limit_bytes=vmem_limit),
    )(xs2d, sw1, sb1, sw2, sb2, xq2d, qw1, qb1, qw2, qb2)
    return ys[:ms, :hid], yq[:mq, :hid]


# --------------------------------------------------------------------------
# Module equivalent
# --------------------------------------------------------------------------
def _xavier_normal(key, shape_out_in, dtype):
    # nn.init.xavier_normal_ on an [out, in] weight: std = sqrt(2/(fan_in+fan_out)).
    fan_out, fan_in = shape_out_in
    std = (2.0 / (fan_in + fan_out)) ** 0.5
    return (jax.random.normal(key, shape_out_in, jnp.float32) * std).astype(dtype)


class ProjectionLayerPallas:
    """JAX/Pallas equivalent of the PyTorch ProjectionLayer (model_path=None)."""

    def __init__(self, key, structure_embedding_dim=128,
                 sequence_embedding_dim=1280, llm_embedding_dim=4096,
                 fusion=False, param_dtype=_COMPUTE_DTYPE, out_dtype=jnp.float32):
        # out_dtype=jnp.bfloat16 is supported and halves output HBM writeback.
        self.fusion = fusion
        self.llm_embedding_dim = llm_embedding_dim
        self.out_dtype = out_dtype
        k = jax.random.split(key, 4)
        D_s, D_q, H = structure_embedding_dim, sequence_embedding_dim, llm_embedding_dim

        # Weights stored pre-transposed [in, out] (bf16); biases f32 (zeros, as
        # the PyTorch module explicitly zero-inits biases when model_path=None).
        self.s_params = (
            _xavier_normal(k[0], (H, D_s), param_dtype).T,
            jnp.zeros((1, H), jnp.float32),
            _xavier_normal(k[1], (H, H), param_dtype).T,
            jnp.zeros((1, H), jnp.float32),
        )
        self.q_params = (
            _xavier_normal(k[2], (H, D_q), param_dtype).T,
            jnp.zeros((1, H), jnp.float32),
            _xavier_normal(k[3], (H, H), param_dtype).T,
            jnp.zeros((1, H), jnp.float32),
        )

    def _project_single(self, x, params):
        if x is None:
            return None
        x2d = x.reshape(-1, x.shape[-1]).astype(_COMPUTE_DTYPE)
        y = _mlp_pallas(x2d, *params, out_dtype=self.out_dtype)
        return y.reshape(*x.shape[:-1], self.llm_embedding_dim)

    def __call__(self, structure_representation, sequence_representation):
        if structure_representation is not None and sequence_representation is not None:
            xs2d = structure_representation.reshape(
                -1, structure_representation.shape[-1]).astype(_COMPUTE_DTYPE)
            xq2d = sequence_representation.reshape(
                -1, sequence_representation.shape[-1]).astype(_COMPUTE_DTYPE)
            ys, yq = _fused_mlp_pallas(xs2d, self.s_params, xq2d, self.q_params,
                                       out_dtype=self.out_dtype)
            structure_embedding = ys.reshape(
                *structure_representation.shape[:-1], self.llm_embedding_dim)
            sequence_embedding = yq.reshape(
                *sequence_representation.shape[:-1], self.llm_embedding_dim)
        else:
            structure_embedding = self._project_single(structure_representation, self.s_params)
            sequence_embedding = self._project_single(sequence_representation, self.q_params)

        if self.fusion:
            # Mirrors the PyTorch module exactly (including its shape[1] quirk).
            return {'fusion_embedding':
                    structure_embedding + sequence_embedding
                    if structure_embedding.shape[1] == sequence_embedding.shape[1]
                    else sequence_embedding}
        return {'structure_embedding': structure_embedding,
                'sequence_embedding': sequence_embedding}


# --------------------------------------------------------------------------
# Demo / correctness check
# --------------------------------------------------------------------------
if __name__ == "__main__":
    key = jax.random.PRNGKey(0)
    k_params, k_struct, k_seq = jax.random.split(key, 3)

    # Small shapes consistent with the module (scaled-down dims).
    # L=7 exercises the token-padding path (14 tokens -> pad to 16, num_m=1).
    B, L = 2, 7
    STRUCT_DIM, SEQ_DIM, LLM_DIM = 128, 256, 512

    layer = ProjectionLayerPallas(
        k_params,
        structure_embedding_dim=STRUCT_DIM,
        sequence_embedding_dim=SEQ_DIM,
        llm_embedding_dim=LLM_DIM,
        fusion=False,
    )

    structure_representation = jax.random.normal(k_struct, (B, L, STRUCT_DIM), jnp.float32)
    sequence_representation = jax.random.normal(k_seq, (B, L, SEQ_DIM), jnp.float32)

    out = layer(structure_representation, sequence_representation)
    jax.block_until_ready(out)

    # Also exercise the single-projection kernel (sequence input = None).
    out_single = layer(structure_representation, None)
    jax.block_until_ready(out_single)

    # Pure-JAX reference matching the kernel's bf16 operand precision.
    def ref_mlp(x, params):
        w1, b1, w2, b2 = params
        xb = x.astype(jnp.bfloat16).astype(jnp.float32)
        h = jnp.maximum(xb @ w1.astype(jnp.float32) + b1, 0.0)
        h = h.astype(jnp.bfloat16).astype(jnp.float32)
        return h @ w2.astype(jnp.float32) + b2

    ref_s = ref_mlp(structure_representation.reshape(-1, STRUCT_DIM),
                    layer.s_params).reshape(B, L, LLM_DIM)
    ref_q = ref_mlp(sequence_representation.reshape(-1, SEQ_DIM),
                    layer.q_params).reshape(B, L, LLM_DIM)

    assert out['structure_embedding'].shape == (B, L, LLM_DIM)
    assert out['sequence_embedding'].shape == (B, L, LLM_DIM)
    assert out_single['sequence_embedding'] is None
    assert jnp.allclose(out['structure_embedding'], ref_s, atol=5e-2, rtol=2e-2)
    assert jnp.allclose(out['sequence_embedding'], ref_q, atol=5e-2, rtol=2e-2)
    assert jnp.allclose(out_single['structure_embedding'], ref_s, atol=5e-2, rtol=2e-2)

    print("KERNEL_OK")
</pallas_src>

<mosaic_0001>
module attributes {stable_mosaic.version = 11 : i64} {
  func.func @_fused_kernel(%arg0: i32, %arg1: i32, %arg2: memref<16x128xbf16, #tpu.memory_space<vmem>>, %arg3: memref<128x512xbf16, #tpu.memory_space<vmem>>, %arg4: memref<1x512xf32, #tpu.memory_space<vmem>>, %arg5: memref<512x512xbf16, #tpu.memory_space<vmem>>, %arg6: memref<1x512xf32, #tpu.memory_space<vmem>>, %arg7: memref<16x256xbf16, #tpu.memory_space<vmem>>, %arg8: memref<256x512xbf16, #tpu.memory_space<vmem>>, %arg9: memref<1x512xf32, #tpu.memory_space<vmem>>, %arg10: memref<512x512xbf16, #tpu.memory_space<vmem>>, %arg11: memref<1x512xf32, #tpu.memory_space<vmem>>, %arg12: memref<16x512xf32, #tpu.memory_space<vmem>>, %arg13: memref<16x512xf32, #tpu.memory_space<vmem>>, %arg14: memref<16x512xbf16, #tpu.memory_space<vmem>>, %arg15: memref<16x512xbf16, #tpu.memory_space<vmem>>) attributes {dimension_semantics = [#tpu.dimension_semantics<parallel>, #tpu.dimension_semantics<arbitrary>], iteration_bounds = array<i64: 1, 1>, scalar_prefetch = 0 : i64, scratch_operands = 2 : i64, tpu.core_type = #tpu.core_type<tc>, window_params = [{transform_indices = @transform_0, window_bounds = array<i64: 16, 128>}, {pipeline_mode = #tpu.pipeline_mode<synchronous>, transform_indices = @transform_1, window_bounds = array<i64: 128, 512>}, {pipeline_mode = #tpu.pipeline_mode<synchronous>, transform_indices = @transform_2, window_bounds = array<i64: 1, 512>}, {transform_indices = @transform_3, window_bounds = array<i64: 512, 512>}, {transform_indices = @transform_4, window_bounds = array<i64: 1, 512>}, {transform_indices = @transform_5, window_bounds = array<i64: 16, 256>}, {pipeline_mode = #tpu.pipeline_mode<synchronous>, transform_indices = @transform_6, window_bounds = array<i64: 256, 512>}, {pipeline_mode = #tpu.pipeline_mode<synchronous>, transform_indices = @transform_7, window_bounds = array<i64: 1, 512>}, {transform_indices = @transform_8, window_bounds = array<i64: 512, 512>}, {transform_indices = @transform_9, window_bounds = array<i64: 1, 512>}, {transform_indices = @transform_10, window_bounds = array<i64: 16, 512>}, {transform_indices = @transform_11, window_bounds = array<i64: 16, 512>}]} {
    %c0_i32 = arith.constant 0 : i32
    %0 = arith.cmpi eq, %arg1, %c0_i32 : i32
    %1 = arith.extui %0 : i1 to i32
    %c0_i32_0 = arith.constant 0 : i32
    %2 = arith.cmpi ne, %1, %c0_i32_0 : i32
    scf.if %2 {
      %c0_18 = arith.constant 0 : index
      %c0_19 = arith.constant 0 : index
      %19 = vector.load %arg2[%c0_18, %c0_19] : memref<16x128xbf16, #tpu.memory_space<vmem>>, vector<16x128xbf16>
      %c0_20 = arith.constant 0 : index
      %c0_21 = arith.constant 0 : index
      %20 = vector.load %arg3[%c0_20, %c0_21] : memref<128x512xbf16, #tpu.memory_space<vmem>>, vector<128x512xbf16>
      %cst_22 = arith.constant dense<0.000000e+00> : vector<16x512xf32>
      %21 = tpu.matmul %19, %20, %cst_22 {dimension_numbers = #tpu.dot_dimension_numbers<[1], [0], [0], [1], [0, 0, 1, 1], [], []>} : vector<16x128xbf16>, vector<128x512xbf16>, vector<16x512xf32> -> vector<16x512xf32>
      %c0_23 = arith.constant 0 : index
      %c0_24 = arith.constant 0 : index
      %22 = vector.load %arg4[%c0_23, %c0_24] : memref<1x512xf32, #tpu.memory_space<vmem>>, vector<1x512xf32>
      %23 = vector.broadcast %22 : vector<1x512xf32> to vector<16x512xf32>
      %24 = arith.addf %21, %23 : vector<16x512xf32>
      %cst_25 = arith.constant 0.000000e+00 : f32
      %25 = vector.broadcast %cst_25 : f32 to vector<16x512xf32>
      %26 = arith.maximumf %24, %25 : vector<16x512xf32>
      %27 = arith.truncf %26 : vector<16x512xf32> to vector<16x512xbf16>
      %c0_26 = arith.constant 0 : index
      %c0_27 = arith.constant 0 : index
      %28 = vector.load %arg14[%c0_26, %c0_27] : memref<16x512xbf16, #tpu.memory_space<vmem>>, vector<16x512xbf16>
      tpu.vector_store %arg14[%c0_26, %c0_27], %27 {strides = array<i32>} : memref<16x512xbf16, #tpu.memory_space<vmem>>, vector<16x512xbf16>,
    } else {
    }
    %c0 = arith.constant 0 : index
    %c0_1 = arith.constant 0 : index
    %3 = vector.load %arg14[%c0, %c0_1] : memref<16x512xbf16, #tpu.memory_space<vmem>>, vector<16x512xbf16>
    %c0_2 = arith.constant 0 : index
    %c0_3 = arith.constant 0 : index
    %4 = vector.load %arg5[%c0_2, %c0_3] : memref<512x512xbf16, #tpu.memory_space<vmem>>, vector<512x512xbf16>
    %cst = arith.constant dense<0.000000e+00> : vector<16x512xf32>
    %5 = tpu.matmul %3, %4, %cst {dimension_numbers = #tpu.dot_dimension_numbers<[1], [0], [0], [1], [0, 0, 1, 1], [], []>} : vector<16x512xbf16>, vector<512x512xbf16>, vector<16x512xf32> -> vector<16x512xf32>
    %c0_4 = arith.constant 0 : index
    %c0_5 = arith.constant 0 : index
    %6 = vector.load %arg6[%c0_4, %c0_5] : memref<1x512xf32, #tpu.memory_space<vmem>>, vector<1x512xf32>
    %7 = vector.broadcast %6 : vector<1x512xf32> to vector<16x512xf32>
    %8 = arith.addf %5, %7 : vector<16x512xf32>
    %c0_6 = arith.constant 0 : index
    %c0_7 = arith.constant 0 : index
    %9 = vector.load %arg12[%c0_6, %c0_7] : memref<16x512xf32, #tpu.memory_space<vmem>>, vector<16x512xf32>
    tpu.vector_store %arg12[%c0_6, %c0_7], %8 {strides = array<i32>} : memref<16x512xf32, #tpu.memory_space<vmem>>, vector<16x512xf32>,
    %10 = arith.extui %0 : i1 to i32
    %c0_i32_8 = arith.constant 0 : i32
    %11 = arith.cmpi ne, %10, %c0_i32_8 : i32
    scf.if %11 {
      %c0_18 = arith.constant 0 : index
      %c0_19 = arith.constant 0 : index
      %19 = vector.load %arg7[%c0_18, %c0_19] : memref<16x256xbf16, #tpu.memory_space<vmem>>, vector<16x256xbf16>
      %c0_20 = arith.constant 0 : index
      %c0_21 = arith.constant 0 : index
      %20 = vector.load %arg8[%c0_20, %c0_21] : memref<256x512xbf16, #tpu.memory_space<vmem>>, vector<256x512xbf16>
      %cst_22 = arith.constant dense<0.000000e+00> : vector<16x512xf32>
      %21 = tpu.matmul %19, %20, %cst_22 {dimension_numbers = #tpu.dot_dimension_numbers<[1], [0], [0], [1], [0, 0, 1, 1], [], []>} : vector<16x256xbf16>, vector<256x512xbf16>, vector<16x512xf32> -> vector<16x512xf32>
      %c0_23 = arith.constant 0 : index
      %c0_24 = arith.constant 0 : index
      %22 = vector.load %arg9[%c0_23, %c0_24] : memref<1x512xf32, #tpu.memory_space<vmem>>, vector<1x512xf32>
      %23 = vector.broadcast %22 : vector<1x512xf32> to vector<16x512xf32>
      %24 = arith.addf %21, %23 : vector<16x512xf32>
      %cst_25 = arith.constant 0.000000e+00 : f32
      %25 = vector.broadcast %cst_25 : f32 to vector<16x512xf32>
      %26 = arith.maximumf %24, %25 : vector<16x512xf32>
      %27 = arith.truncf %26 : vector<16x512xf32> to vector<16x512xbf16>
      %c0_26 = arith.constant 0 : index
      %c0_27 = arith.constant 0 : index
      %28 = vector.load %arg15[%c0_26, %c0_27] : memref<16x512xbf16, #tpu.memory_space<vmem>>, vector<16x512xbf16>
      tpu.vector_store %arg15[%c0_26, %c0_27], %27 {strides = array<i32>} : memref<16x512xbf16, #tpu.memory_space<vmem>>, vector<16x512xbf16>,
    } else {
    }
    %c0_9 = arith.constant 0 : index
    %c0_10 = arith.constant 0 : index
    %12 = vector.load %arg15[%c0_9, %c0_10] : memref<16x512xbf16, #tpu.memory_space<vmem>>, vector<16x512xbf16>
    %c0_11 = arith.constant 0 : index
    %c0_12 = arith.constant 0 : index
    %13 = vector.load %arg10[%c0_11, %c0_12] : memref<512x512xbf16, #tpu.memory_space<vmem>>, vector<512x512xbf16>
    %cst_13 = arith.constant dense<0.000000e+00> : vector<16x512xf32>
    %14 = tpu.matmul %12, %13, %cst_13 {dimension_numbers = #tpu.dot_dimension_numbers<[1], [0], [0], [1], [0, 0, 1, 1], [], []>} : vector<16x512xbf16>, vector<512x512xbf16>, vector<16x512xf32> -> vector<16x512xf32>
    %c0_14 = arith.constant 0 : index
    %c0_15 = arith.constant 0 : index
    %15 = vector.load %arg11[%c0_14, %c0_15] : memref<1x512xf32, #tpu.memory_space<vmem>>, vector<1x512xf32>
    %16 = vector.broadcast %15 : vector<1x512xf32> to vector<16x512xf32>
    %17 = arith.addf %14, %16 : vector<16x512xf32>
    %c0_16 = arith.constant 0 : index
    %c0_17 = arith.constant 0 : index
    %18 = vector.load %arg13[%c0_16, %c0_17] : memref<16x512xf32, #tpu.memory_space<vmem>>, vector<16x512xf32>
    tpu.vector_store %arg13[%c0_16, %c0_17], %17 {strides = array<i32>} : memref<16x512xf32, #tpu.memory_space<vmem>>, vector<16x512xf32>,
    return
  }
  func.func @transform_0(%arg0: i32, %arg1: i32) -> (i32, i32) {
    %c0_i32 = arith.constant 0 : i32
    %c0_i32_0 = arith.constant 0 : i32
    return %arg0, %c0_i32 : i32, i32
  }
  func.func @transform_1(%arg0: i32, %arg1: i32) -> (i32, i32) {
    %c0_i32 = arith.constant 0 : i32
    %c0_i32_0 = arith.constant 0 : i32
    %c0_i32_1 = arith.constant 0 : i32
    return %c0_i32, %c0_i32_0 : i32, i32
  }
  func.func @transform_2(%arg0: i32, %arg1: i32) -> (i32, i32) {
    %c0_i32 = arith.constant 0 : i32
    %c0_i32_0 = arith.constant 0 : i32
    %c0_i32_1 = arith.constant 0 : i32
    return %c0_i32, %c0_i32_0 : i32, i32
  }
  func.func @transform_3(%arg0: i32, %arg1: i32) -> (i32, i32) {
    %c0_i32 = arith.constant 0 : i32
    %c0_i32_0 = arith.constant 0 : i32
    return %c0_i32, %arg1 : i32, i32
  }
  func.func @transform_4(%arg0: i32, %arg1: i32) -> (i32, i32) {
    %c0_i32 = arith.constant 0 : i32
    %c0_i32_0 = arith.constant 0 : i32
    return %c0_i32, %arg1 : i32, i32
  }
  func.func @transform_5(%arg0: i32, %arg1: i32) -> (i32, i32) {
    %c0_i32 = arith.constant 0 : i32
    %c0_i32_0 = arith.constant 0 : i32
    return %arg0, %c0_i32 : i32, i32
  }
  func.func @transform_6(%arg0: i32, %arg1: i32) -> (i32, i32) {
    %c0_i32 = arith.constant 0 : i32
    %c0_i32_0 = arith.constant 0 : i32
    %c0_i32_1 = arith.constant 0 : i32
    return %c0_i32, %c0_i32_0 : i32, i32
  }
  func.func @transform_7(%arg0: i32, %arg1: i32) -> (i32, i32) {
    %c0_i32 = arith.constant 0 : i32
    %c0_i32_0 = arith.constant 0 : i32
    %c0_i32_1 = arith.constant 0 : i32
    return %c0_i32, %c0_i32_0 : i32, i32
  }
  func.func @transform_8(%arg0: i32, %arg1: i32) -> (i32, i32) {
    %c0_i32 = arith.constant 0 : i32
    %c0_i32_0 = arith.constant 0 : i32
    return %c0_i32, %arg1 : i32, i32
  }
  func.func @transform_9(%arg0: i32, %arg1: i32) -> (i32, i32) {
    %c0_i32 = arith.constant 0 : i32
    %c0_i32_0 = arith.constant 0 : i32
    return %c0_i32, %arg1 : i32, i32
  }
  func.func @transform_10(%arg0: i32, %arg1: i32) -> (i32, i32) {
    %c0_i32 = arith.constant 0 : i32
    return %arg0, %arg1 : i32, i32
  }
  func.func @transform_11(%arg0: i32, %arg1: i32) -> (i32, i32) {
    %c0_i32 = arith.constant 0 : i32
    return %arg0, %arg1 : i32, i32
  }
}

</mosaic_0001>

<bundles_post_ra>
// kernel: _fused_mlp_pallas.1
= control target key start
LH: loop header
LB: loop body
LE: loop exit
PB: predicated region body
PF: predicated region fallthrough
CT: control target
= control target key end

     0   :  { %17 = vsyncpa [#allocation5], 0  ;;  %s4500_s0 = inlined_call_operand.hbm [shape: bf16[16,128], index: 0, kind: input, shape index: {}]   ;;  %s4501_s1 = inlined_call_operand.hbm [shape: bf16[128,512], index: 1, kind: input, shape index: {}]   ;;  %s4502_s2 = inlined_call_operand.hbm [shape: f32[1,512], index: 2, kind: input, shape index: {}]   ;;  %s4503_s3 = inlined_call_operand.hbm [shape: bf16[512,512], index: 3, kind: input, shape index: {}]   ;;  %s4504_s4 = inlined_call_operand.hbm [shape: f32[1,512], index: 4, kind: input, shape index: {}]   ;;  %s4505_s5 = inlined_call_operand.hbm [shape: bf16[16,256], index: 5, kind: input, shape index: {}]   ;;  %s4506_s6 = inlined_call_operand.hbm [shape: bf16[256,512], index: 6, kind: input, shape index: {}]   ;;  %s4507_s7 = inlined_call_operand.hbm [shape: f32[1,512], index: 7, kind: input, shape index: {}]   ;;  %s4508_s8 = inlined_call_operand.hbm [shape: bf16[512,512], index: 8, kind: input, shape index: {}]   ;;  %s4509_s9 = inlined_call_operand.hbm [shape: f32[1,512], index: 9, kind: input, shape index: {}]   ;;  %s4510_s10 = inlined_call_operand.hbm [shape: f32[16,512], index: 10, kind: output, shape index: {0}]   ;;  %s4511_s11 = inlined_call_operand.hbm [shape: f32[16,512], index: 11, kind: output, shape index: {1}]  }
   0x1   :  { %18 = vsyncpa [#allocation8], 0 }
   0x2   :  { %19 = vsyncpa [#allocation11], 0 }
   0x3   :  { %20 = vsyncpa [#allocation14], 0 }
   0x4   :  { %21 = vsyncpa [#allocation17], 0 }
   0x5   :  { %22 = vsyncpa [#allocation20], 0 }
   0x6   :  { %23 = vsyncpa [#allocation6], 0 }
   0x7   :  { %24 = vsyncpa [#allocation23], 0  ;;  %s4225_s17 = smov [#allocation7]   ;;  %s3945_s21 = scalar_lea.hbm %s4501_s1, 4096 }
   0x8   :  { %s42_s18 = sshll.u32 %s4225_s17, 4  ;;  %p3946_p0 = scmp.ne.s32.totalorder %s4501_s1, %s3945_s21  ;;  %s43_s18 = int_to_ptr.vmem [resolvable:$true] %s42_s18 }
   0x9   :  { %p3949_p1 = scmp.lt.u32.totalorder %s3945_s21, %s4501_s1 }
   0xb   :  { %p3951_p2 = pnand %p3949_p1, %p3946_p0 }
   0xd   :  { %3954 = shalt.err (!%p3951_p2)
}
   0xe   :  { %s3955_s26 = scalar_lea.vmem %s43_s18, 4096  ;;  %p3960_p4 = scmp.lt.s32.totalorder %s43_s18, %s43_s18 }
   0xf   :  { %p3956_p3 = scmp.ne.s32.totalorder %s43_s18, %s3955_s26  ;;  %p3961_p5 = scmp.lt.s32.totalorder %s3955_s26, %s3955_s26 }
  0x11   :  { %p3962_p6 = por %p3961_p5, %p3960_p4 }
  0x13   :  { %p3963_p7 = pnand %p3962_p6, %p3956_p3 }
  0x15   :  { %3966 = shalt.err (!%p3963_p7)
}
  0x16   :  { %s4226_s27 = smov 256   ;;  %s4227_s28 = smov 16  }
  0x17   :  { %48 = dma.hbm_to_vmem [thread:$0]  %s4501_s1, 4096, %s43_s18, [#allocation8], %s4226_s27, %s4226_s27, %s4227_s28  }
  0x18   :  { %s4228_s12 = smov [#allocation10]   ;;  %s4229_s14 = smov [#allocation13]  }
  0x19   :  { %s64_s13 = sshll.u32 %s4228_s12, 4  ;;  %s86_s15 = sshll.u32 %s4229_s14, 4  ;;  %s65_s13 = int_to_ptr.vmem [resolvable:$true] %s64_s13  ;;  %s87_s15 = int_to_ptr.vmem [resolvable:$true] %s86_s15 }
  0x1a   :  { %s3967_s19 = scalar_lea.hbm %s4503_s3, 16384 }
  0x1b   :  { %p3968_p8 = scmp.ne.s32.totalorder %s4503_s3, %s3967_s19  ;;  %p3971_p9 = scmp.lt.u32.totalorder %s3967_s19, %s4503_s3 }
  0x1d   :  { %p3973_p10 = pnand %p3971_p9, %p3968_p8 }
  0x1f   :  { %3976 = shalt.err (!%p3973_p10)
}
  0x20   :  { %s3977_s1 = scalar_lea.vmem %s65_s13, 16384  ;;  %p3982_p12 = scmp.lt.s32.totalorder %s65_s13, %s65_s13 }
  0x21   :  { %p3978_p11 = scmp.ne.s32.totalorder %s65_s13, %s3977_s1  ;;  %p3983_p13 = scmp.lt.s32.totalorder %s3977_s1, %s3977_s1 }
  0x23   :  { %p3984_p0 = por %p3983_p13, %p3982_p12 }
  0x25   :  { %p3985_p1 = pnand %p3984_p0, %p3978_p11 }
  0x27   :  { %3988 = shalt.err (!%p3985_p1)
}
  0x28   :  { %70 = dma.hbm_to_vmem [thread:$0]  %s4503_s3, 16384, %s65_s13, [#allocation11], %s4226_s27, %s4226_s27, %s4227_s28  }
  0x29   :  { %s3989_s29 = scalar_lea.hbm %s4505_s5, 256 }
  0x2a   :  { %p3990_p2 = scmp.ne.s32.totalorder %s4505_s5, %s3989_s29  ;;  %p3993_p3 = scmp.lt.u32.totalorder %s3989_s29, %s4505_s5 }
  0x2c   :  { %p3995_p4 = pnand %p3993_p3, %p3990_p2 }
  0x2e   :  { %3998 = shalt.err (!%p3995_p4)
}
  0x2f   :  { %s3999_s17 = scalar_lea.vmem %s87_s15, 256  ;;  %p4004_p6 = scmp.lt.s32.totalorder %s87_s15, %s87_s15 }
  0x30   :  { %p4000_p5 = scmp.ne.s32.totalorder %s87_s15, %s3999_s17  ;;  %p4005_p7 = scmp.lt.s32.totalorder %s3999_s17, %s3999_s17 }
  0x32   :  { %p4006_p8 = por %p4005_p7, %p4004_p6 }
  0x34   :  { %p4007_p9 = pnand %p4006_p8, %p4000_p5 }
  0x36   :  { %4010 = shalt.err (!%p4007_p9)
}
  0x37   :  { %s4230_s3 = smov 128   ;;  %s4231_s13 = smov 8  }
  0x38   :  { %92 = dma.hbm_to_vmem [thread:$0]  %s4505_s5, 256, %s87_s15, [#allocation14], %s4230_s3, %s4230_s3, %s4231_s13  }
  0x39   :  { %s4232_s21 = smov [#allocation16]   ;;  %s4233_s23 = smov [#allocation4]  }
  0x3a   :  { %s111_s22 = sshll.u32 %s4232_s21, 4  ;;  %s30_s1 = sshll.u32 %s4233_s23, 4  ;;  %s112_s22 = int_to_ptr.vmem [resolvable:$true] %s111_s22  ;;  %s31_s1 = int_to_ptr.vmem [resolvable:$true] %s30_s1 }
  0x3b   :  { %s4011_s25 = scalar_lea.hbm %s4507_s7, 64 }
  0x3c   :  { %p4012_p10 = scmp.ne.s32.totalorder %s4507_s7, %s4011_s25  ;;  %p4015_p11 = scmp.lt.u32.totalorder %s4011_s25, %s4507_s7 }
  0x3e   :  { %p4017_p12 = pnand %p4015_p11, %p4012_p10 }
  0x40   :  { %4020 = shalt.err (!%p4017_p12)
}
  0x41   :  { %s4021_s5 = scalar_lea.vmem %s112_s22, 64  ;;  %p4026_p0 = scmp.lt.s32.totalorder %s112_s22, %s112_s22 }
  0x42   :  { %p4022_p13 = scmp.ne.s32.totalorder %s112_s22, %s4021_s5  ;;  %p4027_p1 = scmp.lt.s32.totalorder %s4021_s5, %s4021_s5 }
  0x44   :  { %p4028_p2 = por %p4027_p1, %p4026_p0 }
  0x46   :  { %p4029_p3 = pnand %p4028_p2, %p4022_p13 }
  0x48   :  { %4032 = shalt.err (!%p4029_p3)
}
  0x49   :  { %114 = dma.hbm_to_vmem [thread:$0]  %s4507_s7, 64, %s112_s22, [#allocation17]  }
  0x4a   :  { %s4033_s3 = scalar_lea.hbm %s4500_s0, 128 }
  0x4b   :  { %p4034_p4 = scmp.ne.s32.totalorder %s4500_s0, %s4033_s3  ;;  %p4037_p5 = scmp.lt.u32.totalorder %s4033_s3, %s4500_s0 }
  0x4d   :  { %p4039_p6 = pnand %p4037_p5, %p4034_p4 }
  0x4f   :  { %4042 = shalt.err (!%p4039_p6)
}
  0x50   :  { %s4043_s23 = scalar_lea.vmem %s31_s1, 128  ;;  %p4048_p8 = scmp.lt.s32.totalorder %s31_s1, %s31_s1 }
  0x51   :  { %p4044_p7 = scmp.ne.s32.totalorder %s31_s1, %s4043_s23  ;;  %p4049_p9 = scmp.lt.s32.totalorder %s4043_s23, %s4043_s23 }
  0x53   :  { %p4050_p10 = por %p4049_p9, %p4048_p8 }
  0x55   :  { %p4051_p11 = pnand %p4050_p10, %p4044_p7 }
  0x57   :  { %4054 = shalt.err (!%p4051_p11)
}
  0x58   :  { %s4234_s7 = smov 64   ;;  %s4235_s22 = smov 4  }
  0x59   :  { %36 = dma.hbm_to_vmem [thread:$0]  %s4500_s0, 128, %s31_s1, [#allocation5], %s4234_s7, %s4234_s7, %s4235_s22  }
  0x5a   :  { %s4236_s25 = smov [#allocation9]   ;;  %s4237_s29 = smov [#allocation12]  }
  0x5b   :  { %s55_s26 = sshll.u32 %s4236_s25, 4  ;;  %s77_s30 = sshll.u32 %s4237_s29, 4  ;;  %s56_s26 = int_to_ptr.vmem [resolvable:$true] %s55_s26  ;;  %s78_s30 = int_to_ptr.vmem [resolvable:$true] %s77_s30 }
  0x5c   :  { %s4055_s15 = scalar_lea.hbm %s4502_s2, 64 }
  0x5d   :  { %p4056_p12 = scmp.ne.s32.totalorder %s4502_s2, %s4055_s15  ;;  %p4059_p13 = scmp.lt.u32.totalorder %s4055_s15, %s4502_s2 }
  0x5f   :  { %p4061_p0 = pnand %p4059_p13, %p4056_p12 }
  0x61   :  { %4064 = shalt.err (!%p4061_p0)
}
  0x62   :  { %s4065_s0 = scalar_lea.vmem %s56_s26, 64  ;;  %p4070_p2 = scmp.lt.s32.totalorder %s56_s26, %s56_s26 }
  0x63   :  { %p4066_p1 = scmp.ne.s32.totalorder %s56_s26, %s4065_s0  ;;  %p4071_p3 = scmp.lt.s32.totalorder %s4065_s0, %s4065_s0 }
  0x65   :  { %p4072_p4 = por %p4071_p3, %p4070_p2 }
  0x67   :  { %p4073_p5 = pnand %p4072_p4, %p4066_p1 }
  0x69   :  { %4076 = shalt.err (!%p4073_p5)
}
  0x6a   :  { %58 = dma.hbm_to_vmem [thread:$0]  %s4502_s2, 64, %s56_s26, [#allocation8]  }
  0x6b   :  { %s4077_s21 = scalar_lea.hbm %s4504_s4, 64 }
  0x6c   :  { %p4078_p6 = scmp.ne.s32.totalorder %s4504_s4, %s4077_s21  ;;  %p4081_p7 = scmp.lt.u32.totalorder %s4077_s21, %s4504_s4 }
  0x6e   :  { %p4083_p8 = pnand %p4081_p7, %p4078_p6 }
  0x70   :  { %4086 = shalt.err (!%p4083_p8)
}
  0x71   :  { %s4087_s24 = scalar_lea.vmem %s78_s30, 64  ;;  %p4092_p10 = scmp.lt.s32.totalorder %s78_s30, %s78_s30 }
  0x72   :  { %p4088_p9 = scmp.ne.s32.totalorder %s78_s30, %s4087_s24  ;;  %p4093_p11 = scmp.lt.s32.totalorder %s4087_s24, %s4087_s24 }
  0x74   :  { %p4094_p12 = por %p4093_p11, %p4092_p10 }
  0x76   :  { %p4095_p13 = pnand %p4094_p12, %p4088_p9 }
  0x78   :  { %4098 = shalt.err (!%p4095_p13)
}
  0x79   :  { %80 = dma.hbm_to_vmem [thread:$0]  %s4504_s4, 64, %s78_s30, [#allocation11]  }
  0x7a   :  { %s4238_s26 = smov [#allocation15]   ;;  %s4239_s12 = smov [#allocation18]  }
  0x7b   :  { %s98_s29 = sshll.u32 %s4238_s26, 4  ;;  %s120_s5 = sshll.u32 %s4239_s12, 4  ;;  %s99_s29 = int_to_ptr.vmem [resolvable:$true] %s98_s29  ;;  %s121_s5 = int_to_ptr.vmem [resolvable:$true] %s120_s5 }
  0x7c   :  { %s4099_s16 = scalar_lea.hbm %s4506_s6, 8192 }
  0x7d   :  { %p4100_p0 = scmp.ne.s32.totalorder %s4506_s6, %s4099_s16  ;;  %p4103_p1 = scmp.lt.u32.totalorder %s4099_s16, %s4506_s6 }
  0x7f   :  { %p4105_p2 = pnand %p4103_p1, %p4100_p0 }
  0x81   :  { %4108 = shalt.err (!%p4105_p2)
}
  0x82   :  { %s4109_s4 = scalar_lea.vmem %s99_s29, 8192  ;;  %p4114_p4 = scmp.lt.s32.totalorder %s99_s29, %s99_s29 }
  0x83   :  { %p4110_p3 = scmp.ne.s32.totalorder %s99_s29, %s4109_s4  ;;  %p4115_p5 = scmp.lt.s32.totalorder %s4109_s4, %s4109_s4 }
  0x85   :  { %p4116_p6 = por %p4115_p5, %p4114_p4 }
  0x87   :  { %p4117_p7 = pnand %p4116_p6, %p4110_p3 }
  0x89   :  { %4120 = shalt.err (!%p4117_p7)
}
  0x8a   :  { %104 = dma.hbm_to_vmem [thread:$0]  %s4506_s6, 8192, %s99_s29, [#allocation14], %s4226_s27, %s4226_s27, %s4227_s28  }
  0x8b   :  { %s4121_s21 = scalar_lea.hbm %s4508_s8, 16384 }
  0x8c   :  { %p4122_p8 = scmp.ne.s32.totalorder %s4508_s8, %s4121_s21  ;;  %p4125_p9 = scmp.lt.u32.totalorder %s4121_s21, %s4508_s8 }
  0x8e   :  { %p4127_p10 = pnand %p4125_p9, %p4122_p8 }
  0x90   :  { %4130 = shalt.err (!%p4127_p10)
}
  0x91   :  { %s4131_s24 = scalar_lea.vmem %s121_s5, 16384  ;;  %p4136_p12 = scmp.lt.s32.totalorder %s121_s5, %s121_s5 }
  0x92   :  { %p4132_p11 = scmp.ne.s32.totalorder %s121_s5, %s4131_s24  ;;  %p4137_p13 = scmp.lt.s32.totalorder %s4131_s24, %s4131_s24 }
  0x94   :  { %p4138_p0 = por %p4137_p13, %p4136_p12 }
  0x96   :  { %p4139_p1 = pnand %p4138_p0, %p4132_p11 }
  0x98   :  { %4142 = shalt.err (!%p4139_p1)
}
  0x99   :  { %126 = dma.hbm_to_vmem [thread:$0]  %s4508_s8, 16384, %s121_s5, [#allocation17], %s4226_s27, %s4226_s27, %s4227_s28  }
  0x9a   :  { %s4240_s25 = smov [#allocation19]   ;;  %s4143_s15 = scalar_lea.hbm %s4509_s9, 64 }
  0x9b   :  { %s133_s26 = sshll.u32 %s4240_s25, 4  ;;  %p4144_p2 = scmp.ne.s32.totalorder %s4509_s9, %s4143_s15  ;;  %s134_s26 = int_to_ptr.vmem [resolvable:$true] %s133_s26 }
  0x9c   :  { %p4147_p3 = scmp.lt.u32.totalorder %s4143_s15, %s4509_s9 }
  0x9e   :  { %p4149_p4 = pnand %p4147_p3, %p4144_p2 }
  0xa0   :  { %4152 = shalt.err (!%p4149_p4)
}
  0xa1   :  { %s4153_s0 = scalar_lea.vmem %s134_s26, 64  ;;  %p4158_p6 = scmp.lt.s32.totalorder %s134_s26, %s134_s26 }
  0xa2   :  { %p4154_p5 = scmp.ne.s32.totalorder %s134_s26, %s4153_s0  ;;  %p4159_p7 = scmp.lt.s32.totalorder %s4153_s0, %s4153_s0 }
  0xa4   :  { %p4160_p8 = por %p4159_p7, %p4158_p6 }
  0xa6   :  { %p4161_p9 = pnand %p4160_p8, %p4154_p5 }
  0xa8   :  { %4164 = shalt.err (!%p4161_p9)
}
  0xa9   :  { %136 = dma.hbm_to_vmem [thread:$0]  %s4509_s9, 64, %s134_s26, [#allocation20]  }
  0xaa   :  { %4209 = dma.done.wait [#allocation5], 128  }
  0xab   :  { %4210 = vsyncadd [#allocation5], 4294967168 }
  0xac   :  { %4211 = dma.done.wait [#allocation8], 4160  }
  0xad   :  { %4212 = vsyncadd [#allocation8], 4294963136 }
  0xae   :  { %4213 = dma.done.wait [#allocation11], 16448  }
  0xaf   :  { %4214 = vsyncadd [#allocation11], 4294950848 }
  0xb0   :  { %4215 = dma.done.wait [#allocation14], 8448  }
  0xb1   :  { %4216 = vsyncadd [#allocation14], 4294958848 }
  0xb2   :  { %4217 = dma.done.wait [#allocation17], 16448  }
  0xb3   :  { %4218 = vsyncadd [#allocation17], 4294950848 }
  0xb4   :  { %4219 = dma.done.wait [#allocation20], 64  }
  0xb5   :  { %4220 = vsyncadd [#allocation20], 4294967232  ;;  %v4241_v0 = vmov 0   ;;  %v3413_v1 = vld [vmem:[#allocation7 + $0x4] ss:$16 sps:$4 sm:$0xff]   ;;  %v3437_v29 = vld [vmem:[#allocation4] sm:$0xff]  }
  0xb6   :  { %426 = vmatprep.mubr.bf16.mxu0 %v4241_v0  ;;  %469 = vmatprep.mubr.bf16.mxu1 %v4241_v0  ;;  %v3415_v2 = vld [vmem:[#allocation7] ss:$16 sps:$4 sm:$0xff]   ;;  %v3416_v3 = vld [vmem:[#allocation7 + $0x24] ss:$16 sps:$4 sm:$0xff]   ;;  %v3438_v10 = vld [vmem:[#allocation7 + $0xc] ss:$16 sps:$4 sm:$0xff]  }
  0xb7   :  { %394 = vmatprep.subr.bf16.mxu0 %v3413_v1  ;;  %v3418_v4 = vld [vmem:[#allocation7 + $0x20] ss:$16 sps:$4 sm:$0xff]   ;;  %v3419_v5 = vld [vmem:[#allocation7 + $0x44] ss:$16 sps:$4 sm:$0xff]   ;;  %v3440_v11 = vld [vmem:[#allocation7 + $0x8] ss:$16 sps:$4 sm:$0xff]   ;;  %437 = vmatprep.subr.bf16.mxu1 %v3438_v10 }
  0xb8   :  { %395 = vmatpush1.bf16.msra.mxu0 %v3415_v2  ;;  %v3421_v6 = vld [vmem:[#allocation7 + $0x40] ss:$16 sps:$4 sm:$0xff]   ;;  %v3422_v7 = vld [vmem:[#allocation7 + $0x64] ss:$16 sps:$4 sm:$0xff]   ;;  %v3441_v12 = vld [vmem:[#allocation7 + $0x2c] ss:$16 sps:$4 sm:$0xff]   ;;  %438 = vmatpush1.bf16.msra.mxu1 %v3440_v11 }
  0xb9   :  { %396 = vmatprep.subr.bf16.mxu0 %v3416_v3  ;;  %v3424_v8 = vld [vmem:[#allocation7 + $0x60] ss:$16 sps:$4 sm:$0xff]   ;;  %v3425_v9 = vld [vmem:[#allocation7 + $0x84] ss:$16 sps:$4 sm:$0xff]   ;;  %v3443_v14 = vld [vmem:[#allocation7 + $0x28] ss:$16 sps:$4 sm:$0xff]   ;;  %439 = vmatprep.subr.bf16.mxu1 %v3441_v12 }
  0xba   :  { %v3427_v13 = vld [vmem:[#allocation7 + $0x80] ss:$16 sps:$4 sm:$0xff]   ;;  %v3428_v15 = vld [vmem:[#allocation7 + $0xa4] ss:$16 sps:$4 sm:$0xff]   ;;  %v3444_v16 = vld [vmem:[#allocation7 + $0x4c] ss:$16 sps:$4 sm:$0xff]  }
  0xbb   :  { %v3430_v17 = vld [vmem:[#allocation7 + $0xa0] ss:$16 sps:$4 sm:$0xff]   ;;  %v3446_v18 = vld [vmem:[#allocation7 + $0x48] ss:$16 sps:$4 sm:$0xff]   ;;  %v3431_v19 = vld [vmem:[#allocation7 + $0xc4] ss:$16 sps:$4 sm:$0xff]  }
  0xbc   :  { %397 = vmatpush1.bf16.msra.mxu0 %v3418_v4  ;;  %440 = vmatpush1.bf16.msra.mxu1 %v3443_v14  ;;  %v3447_v20 = vld [vmem:[#allocation7 + $0x6c] ss:$16 sps:$4 sm:$0xff]   ;;  %v3433_v21 = vld [vmem:[#allocation7 + $0xc0] ss:$16 sps:$4 sm:$0xff]   ;;  %v3449_v22 = vld [vmem:[#allocation7 + $0x68] ss:$16 sps:$4 sm:$0xff]  }
  0xbd   :  { %398 = vmatprep.subr.bf16.mxu0 %v3419_v5  ;;  %441 = vmatprep.subr.bf16.mxu1 %v3444_v16  ;;  %v3434_v23 = vld [vmem:[#allocation7 + $0xe4] ss:$16 sps:$4 sm:$0xff]   ;;  %v3450_v24 = vld [vmem:[#allocation7 + $0x8c] ss:$16 sps:$4 sm:$0xff]   ;;  %v3436_v25 = vld [vmem:[#allocation7 + $0xe0] ss:$16 sps:$4 sm:$0xff]  }
  0xbe   :  { %v3452_v26 = vld [vmem:[#allocation7 + $0x88] ss:$16 sps:$4 sm:$0xff]   ;;  %v3453_v27 = vld [vmem:[#allocation7 + $0xac] ss:$16 sps:$4 sm:$0xff]   ;;  %v3462_v31 = vld [vmem:[#allocation10] ss:$16 sps:$4 sm:$0xff]  }
  0xbf   :  { %v3464_v28 = vld [vmem:[#allocation10 + $0x4] ss:$16 sps:$4 sm:$0xff]   ;;  %v3456_v32 = vld [vmem:[#allocation7 + $0xcc] ss:$16 sps:$4 sm:$0xff]   ;;  %v3468_v35 = vld [vmem:[#allocation10 + $0x20] ss:$16 sps:$4 sm:$0xff]  }
  0xc0   :  { %399 = vmatpush1.bf16.msra.mxu0 %v3421_v6  ;;  %442 = vmatpush1.bf16.msra.mxu1 %v3446_v18  ;;  %v3455_v30 = vld [vmem:[#allocation7 + $0xa8] ss:$16 sps:$4 sm:$0xff]   ;;  %v3459_v36 = vld [vmem:[#allocation7 + $0xec] ss:$16 sps:$4 sm:$0xff]   ;;  %v3474_v39 = vld [vmem:[#allocation10 + $0x40] ss:$16 sps:$4 sm:$0xff]  }
  0xc1   :  { %400 = vmatprep.subr.bf16.mxu0 %v3422_v7  ;;  %443 = vmatprep.subr.bf16.mxu1 %v3447_v20  ;;  %v3470_v33 = vld [vmem:[#allocation10 + $0x24] ss:$16 sps:$4 sm:$0xff]   ;;  %v3467_v40 = vld [vmem:[#allocation10 + $0xc] ss:$16 sps:$4 sm:$0xff]   ;;  %v3465_v42 = vld [vmem:[#allocation10 + $0x8] ss:$16 sps:$4 sm:$0xff]  }
  0xc2   :  { %v3458_v34 = vld [vmem:[#allocation7 + $0xc8] ss:$16 sps:$4 sm:$0xff]   ;;  %v3480_v43 = vld [vmem:[#allocation10 + $0x60] ss:$16 sps:$4 sm:$0xff]   ;;  %v3473_v44 = vld [vmem:[#allocation10 + $0x2c] ss:$16 sps:$4 sm:$0xff]  }
  0xc3   :  { %v3476_v37 = vld [vmem:[#allocation10 + $0x44] ss:$16 sps:$4 sm:$0xff]   ;;  %v3471_v46 = vld [vmem:[#allocation10 + $0x28] ss:$16 sps:$4 sm:$0xff]   ;;  %v3486_v47 = vld [vmem:[#allocation10 + $0x80] ss:$16 sps:$4 sm:$0xff]  }
  0xc4   :  { %401 = vmatpush1.bf16.msra.mxu0 %v3424_v8  ;;  %444 = vmatpush1.bf16.msra.mxu1 %v3449_v22  ;;  %v3461_v38 = vld [vmem:[#allocation7 + $0xe8] ss:$16 sps:$4 sm:$0xff]   ;;  %v3479_v48 = vld [vmem:[#allocation10 + $0x4c] ss:$16 sps:$4 sm:$0xff]   ;;  %v3477_v50 = vld [vmem:[#allocation10 + $0x48] ss:$16 sps:$4 sm:$0xff]  }
  0xc5   :  { %402 = vmatprep.subr.bf16.mxu0 %v3425_v9  ;;  %445 = vmatprep.subr.bf16.mxu1 %v3450_v24  ;;  %v3482_v41 = vld [vmem:[#allocation10 + $0x64] ss:$16 sps:$4 sm:$0xff]   ;;  %v3492_v51 = vld [vmem:[#allocation10 + $0xa0] ss:$16 sps:$4 sm:$0xff]   ;;  %v3485_v52 = vld [vmem:[#allocation10 + $0x6c] ss:$16 sps:$4 sm:$0xff]  }
  0xc6   :  { %v3488_v45 = vld [vmem:[#allocation10 + $0x84] ss:$16 sps:$4 sm:$0xff]   ;;  %v3483_v54 = vld [vmem:[#allocation10 + $0x68] ss:$16 sps:$4 sm:$0xff]   ;;  %v3498_v55 = vld [vmem:[#allocation10 + $0xc0] ss:$16 sps:$4 sm:$0xff]  }
  0xc7   :  { %v3494_v49 = vld [vmem:[#allocation10 + $0xa4] ss:$16 sps:$4 sm:$0xff]   ;;  %v3491_v56 = vld [vmem:[#allocation10 + $0x8c] ss:$16 sps:$4 sm:$0xff]   ;;  %v3489_v58 = vld [vmem:[#allocation10 + $0x88] ss:$16 sps:$4 sm:$0xff]  }
  0xc8   :  { %403 = vmatpush1.bf16.msra.mxu0 %v3427_v13  ;;  %446 = vmatpush1.bf16.msra.mxu1 %v3452_v26  ;;  %v3500_v53 = vld [vmem:[#allocation10 + $0xc4] ss:$16 sps:$4 sm:$0xff]   ;;  %v3497_v59 = vld [vmem:[#allocation10 + $0xac] ss:$16 sps:$4 sm:$0xff]   ;;  %v3504_v60 = vld [vmem:[#allocation10 + $0xe0] ss:$16 sps:$4 sm:$0xff]  }
  0xc9   :  { %404 = vmatprep.subr.bf16.mxu0 %v3428_v15  ;;  %447 = vmatprep.subr.bf16.mxu1 %v3453_v27  ;;  %v3506_v57 = vld [vmem:[#allocation10 + $0xe4] ss:$16 sps:$4 sm:$0xff]   ;;  %v3495_v62 = vld [vmem:[#allocation10 + $0xa8] ss:$16 sps:$4 sm:$0xff]   ;;  %v3510_v63 = vld [vmem:[#allocation10 + $0x100] ss:$16 sps:$4 sm:$0xff]  }
  0xca   :  { %v3512_v61 = vld [vmem:[#allocation10 + $0x104] ss:$16 sps:$4 sm:$0xff]   ;;  %v3503_v0 = vld [vmem:[#allocation10 + $0xcc] ss:$16 sps:$4 sm:$0xff]   ;;  %v3501_v2 = vld [vmem:[#allocation10 + $0xc8] ss:$16 sps:$4 sm:$0xff]  }
  0xcb   :  { %v3518_v1 = vld [vmem:[#allocation10 + $0x124] ss:$16 sps:$4 sm:$0xff]   ;;  %v3516_v3 = vld [vmem:[#allocation10 + $0x120] ss:$16 sps:$4 sm:$0xff]   ;;  %v3509_v4 = vld [vmem:[#allocation10 + $0xec] ss:$16 sps:$4 sm:$0xff]  }
  0xcc   :  { %405 = vmatpush1.bf16.msra.mxu0 %v3430_v17  ;;  %448 = vmatpush1.bf16.msra.mxu1 %v3455_v30  ;;  %v3524_v5 = vld [vmem:[#allocation10 + $0x144] ss:$16 sps:$4 sm:$0xff]   ;;  %v3507_v6 = vld [vmem:[#allocation10 + $0xe8] ss:$16 sps:$4 sm:$0xff]   ;;  %v3522_v7 = vld [vmem:[#allocation10 + $0x140] ss:$16 sps:$4 sm:$0xff]  }
  0xcd   :  { %406 = vmatprep.subr.bf16.mxu0 %v3431_v19  ;;  %449 = vmatprep.subr.bf16.mxu1 %v3456_v32  ;;  %v3515_v8 = vld [vmem:[#allocation10 + $0x10c] ss:$16 sps:$4 sm:$0xff]   ;;  %v3530_v9 = vld [vmem:[#allocation10 + $0x164] ss:$16 sps:$4 sm:$0xff]   ;;  %v3513_v10 = vld [vmem:[#allocation10 + $0x108] ss:$16 sps:$4 sm:$0xff]  }
  0xce   :  { %v3528_v11 = vld [vmem:[#allocation10 + $0x160] ss:$16 sps:$4 sm:$0xff]   ;;  %v3521_v12 = vld [vmem:[#allocation10 + $0x12c] ss:$16 sps:$4 sm:$0xff]   ;;  %v3536_v13 = vld [vmem:[#allocation10 + $0x184] ss:$16 sps:$4 sm:$0xff]  }
  0xcf   :  { %v3519_v14 = vld [vmem:[#allocation10 + $0x128] ss:$16 sps:$4 sm:$0xff]   ;;  %v3534_v15 = vld [vmem:[#allocation10 + $0x180] ss:$16 sps:$4 sm:$0xff]   ;;  %v3527_v16 = vld [vmem:[#allocation10 + $0x14c] ss:$16 sps:$4 sm:$0xff]  }
  0xd0   :  { %407 = vmatpush1.bf16.msra.mxu0 %v3433_v21  ;;  %450 = vmatpush1.bf16.msra.mxu1 %v3458_v34  ;;  %v3542_v17 = vld [vmem:[#allocation10 + $0x1a4] ss:$16 sps:$4 sm:$0xff]   ;;  %v3525_v18 = vld [vmem:[#allocation10 + $0x148] ss:$16 sps:$4 sm:$0xff]   ;;  %v3540_v19 = vld [vmem:[#allocation10 + $0x1a0] ss:$16 sps:$4 sm:$0xff]  }
  0xd1   :  { %408 = vmatprep.subr.bf16.mxu0 %v3434_v23  ;;  %451 = vmatprep.subr.bf16.mxu1 %v3459_v36  ;;  %v3533_v20 = vld [vmem:[#allocation10 + $0x16c] ss:$16 sps:$4 sm:$0xff]   ;;  %v3531_v21 = vld [vmem:[#allocation10 + $0x168] ss:$16 sps:$4 sm:$0xff]   ;;  %v3548_v26 = vld [vmem:[#allocation10 + $0x1c4] ss:$16 sps:$4 sm:$0xff]   ;;  %v208_v36 = vlaneseq }
  0xd2   :  { %v3539_v22 = vld [vmem:[#allocation10 + $0x18c] ss:$16 sps:$4 sm:$0xff]   ;;  %v3537_v23 = vld [vmem:[#allocation10 + $0x188] ss:$16 sps:$4 sm:$0xff]   ;;  %v3554_v30 = vld [vmem:[#allocation10 + $0x1e4] ss:$16 sps:$4 sm:$0xff]  }
  0xd3   :  { %v3545_v24 = vld [vmem:[#allocation10 + $0x1ac] ss:$16 sps:$4 sm:$0xff]   ;;  %v3552_v32 = vld [vmem:[#allocation10 + $0x1e0] ss:$16 sps:$4 sm:$0xff]   ;;  %v3560_v34 = vld [vmem:[#allocation10 + $0x204] ss:$16 sps:$4 sm:$0xff]  }
  0xd4   :  { %409 = vmatpush1.bf16.msra.mxu0 %v3436_v25  ;;  %452 = vmatpush1.bf16.msra.mxu1 %v3461_v38  ;;  %v3543_v25 = vld [vmem:[#allocation10 + $0x1a8] ss:$16 sps:$4 sm:$0xff]   ;;  %v3551_v27 = vld [vmem:[#allocation10 + $0x1cc] ss:$16 sps:$4 sm:$0xff]   ;;  %s4242_s9 = smov [#allocation21]  }
  0xd5   :  { %1290 = vmatprep.subr.bf16.mxu0 %v3464_v28  ;;  %1376 = vmatprep.subr.bf16.mxu1 %v3467_v40  ;;  %v3546_v28 = vld [vmem:[#allocation10 + $0x1c0] ss:$16 sps:$4 sm:$0xff]   ;;  %s2972_s28 = sshll.u32 %s4242_s9, 4  ;;  %s2973_s28 = int_to_ptr.vmem [resolvable:$true] %s2972_s28 }
  0xd6   :  { %s4165_s5 = scalar_lea.vmem %s2973_s28, 1024  ;;  %p4170_p11 = scmp.lt.s32.totalorder %s2973_s28, %s2973_s28 }
  0xd7   :  { %427 = vmatmul.mubr.bf16.vlgmr.msra.gmra.mrb[0].mxu0 %v3437_v29  ;;  %470 = vmatmul.mubr.bf16.vlgmr.msra.gmra.mrb[0].mxu1 %v3437_v29  ;;  %v3549_v29 = vld [vmem:[#allocation10 + $0x1c8] ss:$16 sps:$4 sm:$0xff]   ;;  %p4166_p10 = scmp.ne.s32.totalorder %s2973_s28, %s4165_s5  ;;  %p4171_p12 = scmp.lt.s32.totalorder %s4165_s5, %s4165_s5 }
  0xd8   :  { %1291 = vmatpush1.bf16.msra.mxu0 %v3462_v31  ;;  %1377 = vmatpush1.bf16.msra.mxu1 %v3465_v42  ;;  %v3557_v31 = vld [vmem:[#allocation10 + $0x1ec] ss:$16 sps:$4 sm:$0xff]  }
  0xd9   :  { %1292 = vmatprep.subr.bf16.mxu0 %v3470_v33  ;;  %1378 = vmatprep.subr.bf16.mxu1 %v3473_v44  ;;  %v3555_v33 = vld [vmem:[#allocation10 + $0x1e8] ss:$16 sps:$4 sm:$0xff]   ;;  %p4172_p13 = por %p4171_p12, %p4170_p11 }
  0xdb   :  { %p4173_p0 = pnand %p4172_p13, %p4166_p10 }
  0xdc   :  { %1293 = vmatpush1.bf16.msra.mxu0 %v3468_v35  ;;  %1379 = vmatpush1.bf16.msra.mxu1 %v3471_v46  ;;  %v3563_v35 = vld [vmem:[#allocation10 + $0x20c] ss:$16 sps:$4 sm:$0xff]  }
  0xdd   :  { %1294 = vmatprep.subr.bf16.mxu0 %v3476_v37  ;;  %1380 = vmatprep.subr.bf16.mxu1 %v3479_v48  ;;  %v209_v37 = vshrl.u32 %v208_v36, 7  ;;  %v3597_v36 = vld [vmem:[#allocation10 + $0x2c8] ss:$16 sps:$4 sm:$0xff]  }
  0xdf   :  { %v4438_v38 = vsub.s32 0, %v209_v37  ;;  %v4440_v40 = vsub.s32 1, %v209_v37 }
  0xe0   :  { %1295 = vmatpush1.bf16.msra.mxu0 %v3474_v39  ;;  %1381 = vmatpush1.bf16.msra.mxu1 %v3477_v50  ;;  %v206_v39 = vld [vmem:[#allocation9] sm:$0xf] }
  0xe1   :  { %1296 = vmatprep.subr.bf16.mxu0 %v3482_v41  ;;  %1382 = vmatprep.subr.bf16.mxu1 %v3485_v52  ;;  %v211_v41 = vrot.slane %v206_v39, %v4438_v38  ;;  %v215_v42 = vrot.slane %v206_v39, %v4440_v40 }
  0xe4   :  { %1297 = vmatpush1.bf16.msra.mxu0 %v3480_v43  ;;  %1383 = vmatpush1.bf16.msra.mxu1 %v3483_v54 }
  0xe5   :  { %1298 = vmatprep.subr.bf16.mxu0 %v3488_v45  ;;  %1384 = vmatprep.subr.bf16.mxu1 %v3491_v56  ;;  %v4446_v56 = vsub.s32 3, %v209_v37 }
  0xe8   :  { %1299 = vmatpush1.bf16.msra.mxu0 %v3486_v47  ;;  %1385 = vmatpush1.bf16.msra.mxu1 %v3489_v58 }
  0xe9   :  { %1300 = vmatprep.subr.bf16.mxu0 %v3494_v49  ;;  %1386 = vmatprep.subr.bf16.mxu1 %v3497_v59  ;;  %v3558_v59 = vld [vmem:[#allocation10 + $0x200] ss:$16 sps:$4 sm:$0xff]  }
  0xec   :  { %1301 = vmatpush1.bf16.msra.mxu0 %v3492_v51  ;;  %1387 = vmatpush1.bf16.msra.mxu1 %v3495_v62  ;;  %v3569_v62 = vld [vmem:[#allocation10 + $0x22c] ss:$16 sps:$4 sm:$0xff]  }
  0xed   :  { %1302 = vmatprep.subr.bf16.mxu0 %v3500_v53  ;;  %1388 = vmatprep.subr.bf16.mxu1 %v3503_v0  ;;  %v4444_v53 = vsub.s32 2, %v209_v37  ;;  %v223_v0 = vrot.slane %v206_v39, %v4446_v56  ;;  %v3602_v37 = vld [vmem:[#allocation10 + $0x2e4] ss:$16 sps:$4 sm:$0xff]  }
  0xf0   :  { %1303 = vmatpush1.bf16.msra.mxu0 %v3498_v55  ;;  %1389 = vmatpush1.bf16.msra.mxu1 %v3501_v2  ;;  %v3567_v2 = vld [vmem:[#allocation10 + $0x228] ss:$16 sps:$4 sm:$0xff]  }
  0xf1   :  { %1304 = vmatprep.subr.bf16.mxu0 %v3506_v57  ;;  %1390 = vmatprep.subr.bf16.mxu1 %v3509_v4  ;;  %v3572_v4 = vld [vmem:[#allocation10 + $0x244] ss:$16 sps:$4 sm:$0xff]  }
  0xf4   :  { %1305 = vmatpush1.bf16.msra.mxu0 %v3504_v60  ;;  %1391 = vmatpush1.bf16.msra.mxu1 %v3507_v6  ;;  %v3561_v60 = vld [vmem:[#allocation10 + $0x208] ss:$16 sps:$4 sm:$0xff]  }
  0xf5   :  { %1306 = vmatprep.subr.bf16.mxu0 %v3512_v61  ;;  %1392 = vmatprep.subr.bf16.mxu1 %v3515_v8  ;;  %v3566_v61 = vld [vmem:[#allocation10 + $0x224] ss:$16 sps:$4 sm:$0xff]  }
  0xf8   :  { %1307 = vmatpush1.bf16.msra.mxu0 %v3510_v63  ;;  %1393 = vmatpush1.bf16.msra.mxu1 %v3513_v10  ;;  %v219_v63 = vrot.slane %v206_v39, %v4444_v53  ;;  %v3605_v39 = vld [vmem:[#allocation10 + $0x2ec] ss:$16 sps:$4 sm:$0xff]  }
  0xf9   :  { %1308 = vmatprep.subr.bf16.mxu0 %v3518_v1  ;;  %1394 = vmatprep.subr.bf16.mxu1 %v3521_v12  ;;  %v3564_v1 = vld [vmem:[#allocation10 + $0x220] ss:$16 sps:$4 sm:$0xff]  }
  0xfc   :  { %1309 = vmatpush1.bf16.msra.mxu0 %v3516_v3  ;;  %1395 = vmatpush1.bf16.msra.mxu1 %v3519_v14  ;;  %v3573_v14 = vld [vmem:[#allocation10 + $0x248] ss:$16 sps:$4 sm:$0xff]  }
  0xfd   :  { %1310 = vmatprep.subr.bf16.mxu0 %v3524_v5  ;;  %1396 = vmatprep.subr.bf16.mxu1 %v3527_v16  ;;  %v3575_v5 = vld [vmem:[#allocation10 + $0x24c] ss:$16 sps:$4 sm:$0xff]  }
 0x100   :  { %1311 = vmatpush1.bf16.msra.mxu0 %v3522_v7  ;;  %1397 = vmatpush1.bf16.msra.mxu1 %v3525_v18  ;;  %v3581_v18 = vld [vmem:[#allocation10 + $0x26c] ss:$16 sps:$4 sm:$0xff]  }
 0x101   :  { %1312 = vmatprep.subr.bf16.mxu0 %v3530_v9  ;;  %1398 = vmatprep.subr.bf16.mxu1 %v3533_v20 }
 0x104   :  { %1313 = vmatpush1.bf16.msra.mxu0 %v3528_v11  ;;  %1399 = vmatpush1.bf16.msra.mxu1 %v3531_v21 }
 0x105   :  { %1314 = vmatprep.subr.bf16.mxu0 %v3536_v13  ;;  %1400 = vmatprep.subr.bf16.mxu1 %v3539_v22  ;;  %v3570_v13 = vld [vmem:[#allocation10 + $0x240] ss:$16 sps:$4 sm:$0xff]  }
 0x106   :  { %v3576_v22 = vld [vmem:[#allocation10 + $0x260] ss:$16 sps:$4 sm:$0xff]  }
 0x108   :  { %1315 = vmatpush1.bf16.msra.mxu0 %v3534_v15  ;;  %1401 = vmatpush1.bf16.msra.mxu1 %v3537_v23  ;;  %v3579_v23 = vld [vmem:[#allocation10 + $0x268] ss:$16 sps:$4 sm:$0xff]  }
 0x109   :  { %1316 = vmatprep.subr.bf16.mxu0 %v3542_v17  ;;  %1402 = vmatprep.subr.bf16.mxu1 %v3545_v24  ;;  %v3578_v17 = vld [vmem:[#allocation10 + $0x264] ss:$16 sps:$4 sm:$0xff]  }
 0x10c   :  { %1317 = vmatpush1.bf16.msra.mxu0 %v3540_v19  ;;  %1403 = vmatpush1.bf16.msra.mxu1 %v3543_v25  ;;  %v3584_v25 = vld [vmem:[#allocation10 + $0x284] ss:$16 sps:$4 sm:$0xff]  }
 0x10d   :  { %1318 = vmatprep.subr.bf16.mxu0 %v3548_v26  ;;  %1404 = vmatprep.subr.bf16.mxu1 %v3551_v27  ;;  %v3587_v26 = vld [vmem:[#allocation10 + $0x28c] ss:$16 sps:$4 sm:$0xff]   ;;  %v3582_v27 = vld [vmem:[#allocation10 + $0x280] ss:$16 sps:$4 sm:$0xff]  }
 0x110   :  { %1319 = vmatpush1.bf16.msra.mxu0 %v3546_v28  ;;  %1405 = vmatpush1.bf16.msra.mxu1 %v3549_v29  ;;  %v3585_v28 = vld [vmem:[#allocation10 + $0x288] ss:$16 sps:$4 sm:$0xff]   ;;  %v3590_v29 = vld [vmem:[#allocation10 + $0x2a4] ss:$16 sps:$4 sm:$0xff]  }
 0x111   :  { %1320 = vmatprep.subr.bf16.mxu0 %v3554_v30  ;;  %1406 = vmatprep.subr.bf16.mxu1 %v3557_v31  ;;  %v3593_v30 = vld [vmem:[#allocation10 + $0x2ac] ss:$16 sps:$4 sm:$0xff]   ;;  %v3588_v31 = vld [vmem:[#allocation10 + $0x2a0] ss:$16 sps:$4 sm:$0xff]  }
 0x114   :  { %1321 = vmatpush1.bf16.msra.mxu0 %v3552_v32  ;;  %1407 = vmatpush1.bf16.msra.mxu1 %v3555_v33  ;;  %v3591_v32 = vld [vmem:[#allocation10 + $0x2a8] ss:$16 sps:$4 sm:$0xff]   ;;  %v3596_v33 = vld [vmem:[#allocation10 + $0x2c4] ss:$16 sps:$4 sm:$0xff]  }
 0x115   :  { %1333 = vmatprep.subr.bf16.mxu0 %v3560_v34  ;;  %1419 = vmatprep.subr.bf16.mxu1 %v3563_v35  ;;  %v3599_v34 = vld [vmem:[#allocation10 + $0x2cc] ss:$16 sps:$4 sm:$0xff]   ;;  %v3594_v35 = vld [vmem:[#allocation10 + $0x2c0] ss:$16 sps:$4 sm:$0xff]  }
 0x1aa   :  { %v428_v43 = vpop.f32.mrb[0].mxu0  ;;  %v471_v3 = vpop.f32.mrb[0].mxu1 }
 0x1ab   :  { %v429_v44 = vadd.f32 %v428_v43, %v211_v41  ;;  %v430_v45 = vpop.f32.mrb[1].mxu0  ;;  %v472_v6 = vadd.f32 %v471_v3, %v219_v63  ;;  %v473_v7 = vpop.f32.mrb[1].mxu1  ;;  %v3608_v43 = vld [vmem:[#allocation10 + $0x304] ss:$16 sps:$4 sm:$0xff]   ;;  %v3636_v3 = vld [vmem:[#allocation10 + $0x3a0] ss:$16 sps:$4 sm:$0xff]  }
 0x1ac   :  { %v431_v46 = vadd.f32 %v430_v45, %v215_v42  ;;  %v432_v47 = vpop.f32.mrb[2].mxu0  ;;  %v474_v8 = vadd.f32 %v473_v7, %v223_v0  ;;  %v475_v9 = vpop.f32.mrb[2].mxu1  ;;  %v3606_v45 = vld [vmem:[#allocation10 + $0x300] ss:$16 sps:$4 sm:$0xff]  }
 0x1ad   :  { %v433_v48 = vadd.f32 %v432_v47, %v211_v41  ;;  %v434_v49 = vpop.f32.mrb[3].mxu0  ;;  %v480_v51 = vmax.f32 %v429_v44, 0.0  ;;  %v482_v10 = vmax.f32 %v472_v6, 0.0  ;;  %v476_v11 = vadd.f32 %v475_v9, %v219_v63  ;;  %v477_v12 = vpop.f32.mrb[3].mxu1  ;;  %v3600_v41 = vld [vmem:[#allocation10 + $0x2e0] ss:$16 sps:$4 sm:$0xff]  }
 0x1ae   :  { %v435_v50 = vadd.f32 %v434_v49, %v215_v42  ;;  %v481_v54 = vmax.f32 %v431_v46, 0.0  ;;  %v483_v15 = vmax.f32 %v474_v8, 0.0  ;;  %v478_v16 = vadd.f32 %v477_v12, %v223_v0  ;;  %v3603_v42 = vld [vmem:[#allocation10 + $0x2e8] ss:$16 sps:$4 sm:$0xff]   ;;  %v3611_v44 = vld [vmem:[#allocation10 + $0x30c] ss:$16 sps:$4 sm:$0xff]  }
 0x1af   :  { %v484_v52 = vmax.f32 %v433_v48, 0.0  ;;  %v486_v19 = vmax.f32 %v476_v11, 0.0  ;;  %v3609_v46 = vld [vmem:[#allocation10 + $0x308] ss:$16 sps:$4 sm:$0xff]   ;;  %v3614_v47 = vld [vmem:[#allocation10 + $0x324] ss:$16 sps:$4 sm:$0xff]  }
 0x1b0   :  { %v485_v55 = vmax.f32 %v435_v50, 0.0  ;;  %v487_v20 = vmax.f32 %v478_v16, 0.0  ;;  %v3617_v48 = vld [vmem:[#allocation10 + $0x32c] ss:$16 sps:$4 sm:$0xff]   ;;  %v3612_v49 = vld [vmem:[#allocation10 + $0x320] ss:$16 sps:$4 sm:$0xff]  }
 0x1b1   :  { %v488_v57 = vpack.c.bf16 %v484_v52, %v480_v51  ;;  %v4450_v21 = vpack.c.bf16 %v486_v19, %v482_v10  ;;  %v3615_v50 = vld [vmem:[#allocation10 + $0x328] ss:$16 sps:$4 sm:$0xff]   ;;  %v3620_v51 = vld [vmem:[#allocation10 + $0x344] ss:$16 sps:$4 sm:$0xff]   ;;  %v3623_v52 = vld [vmem:[#allocation10 + $0x34c] ss:$16 sps:$4 sm:$0xff]  }
 0x1b2   :  { %v489_v58 = vpack.c.bf16 %v485_v55, %v481_v54  ;;  %v491_v24 = vpack.c.bf16 %v487_v20, %v483_v15  ;;  %v3618_v54 = vld [vmem:[#allocation10 + $0x340] ss:$16 sps:$4 sm:$0xff]   ;;  %v3621_v55 = vld [vmem:[#allocation10 + $0x348] ss:$16 sps:$4 sm:$0xff]   ;;  %v3647_v6 = vld [vmem:[#allocation10 + $0x3cc] ss:$16 sps:$4 sm:$0xff]  }
 0x1b3   :  { %v3630_v63 = vld [vmem:[#allocation10 + $0x380] ss:$16 sps:$4 sm:$0xff]   ;;  %v3633_v0 = vld [vmem:[#allocation10 + $0x388] ss:$16 sps:$4 sm:$0xff]   ;;  %v3650_v9 = vld [vmem:[#allocation10 + $0x3e4] ss:$16 sps:$4 sm:$0xff]  }
 0x1b4   :  { %1322 = vmatprep.mubr.bf16.mxu0 %v489_v58  ;;  %1408 = vmatprep.mubr.bf16.mxu1 %v489_v58  ;;  %v3629_v58 = vld [vmem:[#allocation10 + $0x36c] ss:$16 sps:$4 sm:$0xff]   ;;  %v3642_v7 = vld [vmem:[#allocation10 + $0x3c0] ss:$16 sps:$4 sm:$0xff]   ;;  %v3645_v8 = vld [vmem:[#allocation10 + $0x3c8] ss:$16 sps:$4 sm:$0xff]  }
 0x1b5   :  { %1323 = vmatmul.mubr.bf16.vlgmr.msra.gmra.mrb[4].mxu0 %v488_v57  ;;  %1409 = vmatmul.mubr.bf16.vlgmr.msra.gmra.mrb[4].mxu1 %v488_v57  ;;  %v3626_v57 = vld [vmem:[#allocation10 + $0x364] ss:$16 sps:$4 sm:$0xff]   ;;  %v3653_v10 = vld [vmem:[#allocation10 + $0x3ec] ss:$16 sps:$4 sm:$0xff]   ;;  %v3648_v11 = vld [vmem:[#allocation10 + $0x3e0] ss:$16 sps:$4 sm:$0xff]  }
 0x1b6   :  { %1334 = vmatpush1.bf16.msra.mxu0 %v3558_v59  ;;  %1420 = vmatpush1.bf16.msra.mxu1 %v3561_v60  ;;  %v3624_v59 = vld [vmem:[#allocation10 + $0x360] ss:$16 sps:$4 sm:$0xff]   ;;  %v3627_v60 = vld [vmem:[#allocation10 + $0x368] ss:$16 sps:$4 sm:$0xff]   ;;  %v3654_v15 = vld [vmem:[#allocation15] ss:$16 sps:$4 sm:$0xff]  }
 0x1b7   :  { %1335 = vmatprep.subr.bf16.mxu0 %v3566_v61  ;;  %1421 = vmatprep.subr.bf16.mxu1 %v3569_v62  ;;  %v3632_v61 = vld [vmem:[#allocation10 + $0x384] ss:$16 sps:$4 sm:$0xff]   ;;  %v3635_v62 = vld [vmem:[#allocation10 + $0x38c] ss:$16 sps:$4 sm:$0xff]   ;;  %v3651_v12 = vld [vmem:[#allocation10 + $0x3e8] ss:$16 sps:$4 sm:$0xff]  }
 0x1b8   :  { %1365 = vmatprep.mubr.bf16.mxu0 %v491_v24  ;;  %1451 = vmatprep.mubr.bf16.mxu1 %v491_v24  ;;  %v3702_v16 = vld [vmem:[#allocation15 + $0x8] ss:$16 sps:$4 sm:$0xff]   ;;  %v3710_v19 = vld [vmem:[#allocation15 + $0x2c] ss:$16 sps:$4 sm:$0xff]   ;;  %v3657_v20 = vld [vmem:[#allocation15 + $0x20] ss:$16 sps:$4 sm:$0xff]  }
 0x1b9   :  { %v3713_v24 = vld [vmem:[#allocation15 + $0x4c] ss:$16 sps:$4 sm:$0xff]  }
 0x1ba   :  { %1336 = vmatpush1.bf16.msra.mxu0 %v3564_v1  ;;  %1422 = vmatpush1.bf16.msra.mxu1 %v3567_v2  ;;  %v3638_v1 = vld [vmem:[#allocation10 + $0x3a4] ss:$16 sps:$4 sm:$0xff]   ;;  %v3641_v2 = vld [vmem:[#allocation10 + $0x3ac] ss:$16 sps:$4 sm:$0xff]  }
 0x1bb   :  { %1337 = vmatprep.subr.bf16.mxu0 %v3572_v4  ;;  %1423 = vmatprep.subr.bf16.mxu1 %v3575_v5  ;;  %v3639_v4 = vld [vmem:[#allocation10 + $0x3a8] ss:$16 sps:$4 sm:$0xff]   ;;  %v3644_v5 = vld [vmem:[#allocation10 + $0x3c4] ss:$16 sps:$4 sm:$0xff]  }
 0x1be   :  { %1338 = vmatpush1.bf16.msra.mxu0 %v3570_v13  ;;  %1424 = vmatpush1.bf16.msra.mxu1 %v3573_v14  ;;  %v3656_v13 = vld [vmem:[#allocation15 + $0x4] ss:$16 sps:$4 sm:$0xff]   ;;  %v3704_v14 = vld [vmem:[#allocation15 + $0xc] ss:$16 sps:$4 sm:$0xff]  }
 0x1bf   :  { %1339 = vmatprep.subr.bf16.mxu0 %v3578_v17  ;;  %1425 = vmatprep.subr.bf16.mxu1 %v3581_v18  ;;  %v3659_v17 = vld [vmem:[#allocation15 + $0x24] ss:$16 sps:$4 sm:$0xff]  }
 0x1c0   :  { %v3707_v18 = vld [vmem:[#allocation13 + $0x4] ss:$8 sps:$4 sm:$0xff]  }
 0x1c2   :  { %1340 = vmatpush1.bf16.msra.mxu0 %v3576_v22  ;;  %1426 = vmatpush1.bf16.msra.mxu1 %v3579_v23  ;;  %v3708_v22 = vld [vmem:[#allocation15 + $0x28] ss:$16 sps:$4 sm:$0xff]   ;;  %v3662_v23 = vld [vmem:[#allocation15 + $0x44] ss:$16 sps:$4 sm:$0xff]  }
 0x1c3   :  { %1341 = vmatprep.subr.bf16.mxu0 %v3584_v25  ;;  %1427 = vmatprep.subr.bf16.mxu1 %v3587_v26  ;;  %v3660_v25 = vld [vmem:[#allocation15 + $0x40] ss:$16 sps:$4 sm:$0xff]   ;;  %v3711_v26 = vld [vmem:[#allocation15 + $0x48] ss:$16 sps:$4 sm:$0xff]  }
 0x1c6   :  { %1342 = vmatpush1.bf16.msra.mxu0 %v3582_v27  ;;  %1428 = vmatpush1.bf16.msra.mxu1 %v3585_v28  ;;  %v3665_v27 = vld [vmem:[#allocation15 + $0x64] ss:$16 sps:$4 sm:$0xff]   ;;  %v3716_v28 = vld [vmem:[#allocation15 + $0x6c] ss:$16 sps:$4 sm:$0xff]  }
 0x1c7   :  { %1343 = vmatprep.subr.bf16.mxu0 %v3590_v29  ;;  %1429 = vmatprep.subr.bf16.mxu1 %v3593_v30  ;;  %v3714_v29 = vld [vmem:[#allocation15 + $0x68] ss:$16 sps:$4 sm:$0xff]   ;;  %v3668_v30 = vld [vmem:[#allocation15 + $0x84] ss:$16 sps:$4 sm:$0xff]  }
 0x1ca   :  { %1344 = vmatpush1.bf16.msra.mxu0 %v3588_v31  ;;  %1430 = vmatpush1.bf16.msra.mxu1 %v3591_v32  ;;  %v3719_v31 = vld [vmem:[#allocation15 + $0x8c] ss:$16 sps:$4 sm:$0xff]   ;;  %v3666_v32 = vld [vmem:[#allocation15 + $0x80] ss:$16 sps:$4 sm:$0xff]  }
 0x1cb   :  { %1345 = vmatprep.subr.bf16.mxu0 %v3596_v33  ;;  %1431 = vmatprep.subr.bf16.mxu1 %v3599_v34  ;;  %v3717_v33 = vld [vmem:[#allocation15 + $0x88] ss:$16 sps:$4 sm:$0xff]   ;;  %v3671_v34 = vld [vmem:[#allocation15 + $0xa4] ss:$16 sps:$4 sm:$0xff]  }
 0x1ce   :  { %1346 = vmatpush1.bf16.msra.mxu0 %v3594_v35  ;;  %1432 = vmatpush1.bf16.msra.mxu1 %v3597_v36  ;;  %v3722_v35 = vld [vmem:[#allocation15 + $0xac] ss:$16 sps:$4 sm:$0xff]   ;;  %v3669_v36 = vld [vmem:[#allocation15 + $0xa0] ss:$16 sps:$4 sm:$0xff]  }
 0x1cf   :  { %1347 = vmatprep.subr.bf16.mxu0 %v3602_v37  ;;  %1433 = vmatprep.subr.bf16.mxu1 %v3605_v39  ;;  %v3720_v37 = vld [vmem:[#allocation15 + $0xa8] ss:$16 sps:$4 sm:$0xff]   ;;  %v3674_v39 = vld [vmem:[#allocation15 + $0xc4] ss:$16 sps:$4 sm:$0xff]  }
 0x1d2   :  { %1348 = vmatpush1.bf16.msra.mxu0 %v3600_v41  ;;  %1434 = vmatpush1.bf16.msra.mxu1 %v3603_v42  ;;  %v3725_v41 = vld [vmem:[#allocation15 + $0xcc] ss:$16 sps:$4 sm:$0xff]   ;;  %v3672_v42 = vld [vmem:[#allocation15 + $0xc0] ss:$16 sps:$4 sm:$0xff]  }
 0x1d3   :  { %1349 = vmatprep.subr.bf16.mxu0 %v3608_v43  ;;  %1435 = vmatprep.subr.bf16.mxu1 %v3611_v44  ;;  %v3723_v43 = vld [vmem:[#allocation15 + $0xc8] ss:$16 sps:$4 sm:$0xff]   ;;  %v3677_v44 = vld [vmem:[#allocation15 + $0xe4] ss:$16 sps:$4 sm:$0xff]  }
 0x1d6   :  { %1350 = vmatpush1.bf16.msra.mxu0 %v3606_v45  ;;  %1436 = vmatpush1.bf16.msra.mxu1 %v3609_v46  ;;  %v3728_v45 = vld [vmem:[#allocation15 + $0xec] ss:$16 sps:$4 sm:$0xff]   ;;  %v3675_v46 = vld [vmem:[#allocation15 + $0xe0] ss:$16 sps:$4 sm:$0xff]  }
 0x1d7   :  { %1351 = vmatprep.subr.bf16.mxu0 %v3614_v47  ;;  %1437 = vmatprep.subr.bf16.mxu1 %v3617_v48  ;;  %v3726_v47 = vld [vmem:[#allocation15 + $0xe8] ss:$16 sps:$4 sm:$0xff]   ;;  %v3680_v48 = vld [vmem:[#allocation15 + $0x104] ss:$16 sps:$4 sm:$0xff]  }
 0x1da   :  { %1352 = vmatpush1.bf16.msra.mxu0 %v3612_v49  ;;  %1438 = vmatpush1.bf16.msra.mxu1 %v3615_v50  ;;  %v3731_v49 = vld [vmem:[#allocation15 + $0x10c] ss:$16 sps:$4 sm:$0xff]   ;;  %v3678_v50 = vld [vmem:[#allocation15 + $0x100] ss:$16 sps:$4 sm:$0xff]  }
 0x1db   :  { %1353 = vmatprep.subr.bf16.mxu0 %v3620_v51  ;;  %1439 = vmatprep.subr.bf16.mxu1 %v3623_v52  ;;  %v3729_v51 = vld [vmem:[#allocation15 + $0x108] ss:$16 sps:$4 sm:$0xff]   ;;  %v3683_v52 = vld [vmem:[#allocation15 + $0x124] ss:$16 sps:$4 sm:$0xff]  }
 0x1de   :  { %1354 = vmatpush1.bf16.msra.mxu0 %v3618_v54  ;;  %1440 = vmatpush1.bf16.msra.mxu1 %v3621_v55  ;;  %v3734_v54 = vld [vmem:[#allocation15 + $0x12c] ss:$16 sps:$4 sm:$0xff]   ;;  %v3681_v55 = vld [vmem:[#allocation15 + $0x120] ss:$16 sps:$4 sm:$0xff]  }
 0x1df   :  { %1355 = vmatprep.subr.bf16.mxu0 %v3626_v57  ;;  %1441 = vmatprep.subr.bf16.mxu1 %v3629_v58  ;;  %v3732_v57 = vld [vmem:[#allocation15 + $0x128] ss:$16 sps:$4 sm:$0xff]   ;;  %v3686_v58 = vld [vmem:[#allocation15 + $0x144] ss:$16 sps:$4 sm:$0xff]  }
 0x1e2   :  { %1356 = vmatpush1.bf16.msra.mxu0 %v3624_v59  ;;  %1442 = vmatpush1.bf16.msra.mxu1 %v3627_v60  ;;  %v3737_v59 = vld [vmem:[#allocation15 + $0x14c] ss:$16 sps:$4 sm:$0xff]   ;;  %v3684_v60 = vld [vmem:[#allocation15 + $0x140] ss:$16 sps:$4 sm:$0xff]  }
 0x1e3   :  { %1357 = vmatprep.subr.bf16.mxu0 %v3632_v61  ;;  %1443 = vmatprep.subr.bf16.mxu1 %v3635_v62  ;;  %v3735_v61 = vld [vmem:[#allocation15 + $0x148] ss:$16 sps:$4 sm:$0xff]   ;;  %v3689_v62 = vld [vmem:[#allocation15 + $0x164] ss:$16 sps:$4 sm:$0xff]  }
 0x1e6   :  { %1358 = vmatpush1.bf16.msra.mxu0 %v3630_v63  ;;  %1444 = vmatpush1.bf16.msra.mxu1 %v3633_v0  ;;  %v3740_v63 = vld [vmem:[#allocation15 + $0x16c] ss:$16 sps:$4 sm:$0xff]   ;;  %v3687_v0 = vld [vmem:[#allocation15 + $0x160] ss:$16 sps:$4 sm:$0xff]  }
 0x1e7   :  { %1359 = vmatprep.subr.bf16.mxu0 %v3638_v1  ;;  %1445 = vmatprep.subr.bf16.mxu1 %v3641_v2  ;;  %v3738_v1 = vld [vmem:[#allocation15 + $0x168] ss:$16 sps:$4 sm:$0xff]   ;;  %v3692_v2 = vld [vmem:[#allocation15 + $0x184] ss:$16 sps:$4 sm:$0xff]  }
 0x1ea   :  { %1360 = vmatpush1.bf16.msra.mxu0 %v3636_v3  ;;  %1446 = vmatpush1.bf16.msra.mxu1 %v3639_v4  ;;  %v3743_v3 = vld [vmem:[#allocation15 + $0x18c] ss:$16 sps:$4 sm:$0xff]   ;;  %v3690_v4 = vld [vmem:[#allocation15 + $0x180] ss:$16 sps:$4 sm:$0xff]  }
 0x1eb   :  { %1361 = vmatprep.subr.bf16.mxu0 %v3644_v5  ;;  %1447 = vmatprep.subr.bf16.mxu1 %v3647_v6  ;;  %v3741_v5 = vld [vmem:[#allocation15 + $0x188] ss:$16 sps:$4 sm:$0xff]   ;;  %v3695_v6 = vld [vmem:[#allocation15 + $0x1a4] ss:$16 sps:$4 sm:$0xff]  }
 0x1ee   :  { %1362 = vmatpush1.bf16.msra.mxu0 %v3642_v7  ;;  %1448 = vmatpush1.bf16.msra.mxu1 %v3645_v8  ;;  %v3746_v7 = vld [vmem:[#allocation15 + $0x1ac] ss:$16 sps:$4 sm:$0xff]   ;;  %v3693_v8 = vld [vmem:[#allocation15 + $0x1a0] ss:$16 sps:$4 sm:$0xff]  }
 0x1ef   :  { %1363 = vmatprep.subr.bf16.mxu0 %v3650_v9  ;;  %1449 = vmatprep.subr.bf16.mxu1 %v3653_v10  ;;  %v3744_v9 = vld [vmem:[#allocation15 + $0x1a8] ss:$16 sps:$4 sm:$0xff]   ;;  %v3698_v10 = vld [vmem:[#allocation15 + $0x1c4] ss:$16 sps:$4 sm:$0xff]  }
 0x1f2   :  { %1364 = vmatpush1.bf16.msra.mxu0 %v3648_v11  ;;  %1450 = vmatpush1.bf16.msra.mxu1 %v3651_v12  ;;  %v3749_v11 = vld [vmem:[#allocation15 + $0x1cc] ss:$16 sps:$4 sm:$0xff]   ;;  %v3696_v12 = vld [vmem:[#allocation15 + $0x1c0] ss:$16 sps:$4 sm:$0xff]  }
 0x1f3   :  { %1891 = vmatprep.subr.bf16.mxu0 %v3656_v13  ;;  %1934 = vmatprep.subr.bf16.mxu1 %v3704_v14  ;;  %v3747_v13 = vld [vmem:[#allocation15 + $0x1c8] ss:$16 sps:$4 sm:$0xff]   ;;  %v3701_v14 = vld [vmem:[#allocation15 + $0x1e4] ss:$16 sps:$4 sm:$0xff]  }
 0x1f5   :  { %1366 = vmatmul.mubr.bf16.vlgmr.msra.gmra.mrb[4].mxu0 %v4450_v21  ;;  %1452 = vmatmul.mubr.bf16.vlgmr.msra.gmra.mrb[4].mxu1 %v4450_v21  ;;  %v3663_v21 = vld [vmem:[#allocation15 + $0x60] ss:$16 sps:$4 sm:$0xff]  }
 0x1f6   :  { %1892 = vmatpush1.bf16.msra.mxu0 %v3654_v15  ;;  %1935 = vmatpush1.bf16.msra.mxu1 %v3702_v16  ;;  %v3752_v15 = vld [vmem:[#allocation15 + $0x1ec] ss:$16 sps:$4 sm:$0xff]   ;;  %v3699_v16 = vld [vmem:[#allocation15 + $0x1e0] ss:$16 sps:$4 sm:$0xff]  }
 0x1f7   :  { %1893 = vmatprep.subr.bf16.mxu0 %v3659_v17  ;;  %1923 = vmatprep.mubr.bf16.mxu0 %v3707_v18  ;;  %v3750_v17 = vld [vmem:[#allocation15 + $0x1e8] ss:$16 sps:$4 sm:$0xff]  }
 0x1f8   :  { %1936 = vmatprep.subr.bf16.mxu1 %v3710_v19  ;;  %1966 = vmatprep.mubr.bf16.mxu1 %v3707_v18  ;;  %v3705_v18 = vld [vmem:[#allocation13] ss:$8 sps:$4 sm:$0xff]   ;;  %v3753_v19 = vld [vmem:[#allocation18] ss:$16 sps:$4 sm:$0xff]  }
 0x1fa   :  { %1894 = vmatpush1.bf16.msra.mxu0 %v3657_v20  ;;  %1937 = vmatpush1.bf16.msra.mxu1 %v3708_v22  ;;  %v3755_v20 = vld [vmem:[#allocation18 + $0x4] ss:$16 sps:$4 sm:$0xff]   ;;  %v3756_v22 = vld [vmem:[#allocation18 + $0x8] ss:$16 sps:$4 sm:$0xff]  }
 0x1fb   :  { %1895 = vmatprep.subr.bf16.mxu0 %v3662_v23  ;;  %1938 = vmatprep.subr.bf16.mxu1 %v3713_v24  ;;  %v3758_v23 = vld [vmem:[#allocation18 + $0xc] ss:$16 sps:$4 sm:$0xff]   ;;  %v3761_v24 = vld [vmem:[#allocation18 + $0x24] ss:$16 sps:$4 sm:$0xff]  }
 0x1fe   :  { %1896 = vmatpush1.bf16.msra.mxu0 %v3660_v25  ;;  %1939 = vmatpush1.bf16.msra.mxu1 %v3711_v26  ;;  %v3764_v25 = vld [vmem:[#allocation18 + $0x2c] ss:$16 sps:$4 sm:$0xff]   ;;  %v3759_v26 = vld [vmem:[#allocation18 + $0x20] ss:$16 sps:$4 sm:$0xff]  }
 0x1ff   :  { %1897 = vmatprep.subr.bf16.mxu0 %v3665_v27  ;;  %1940 = vmatprep.subr.bf16.mxu1 %v3716_v28  ;;  %v3762_v27 = vld [vmem:[#allocation18 + $0x28] ss:$16 sps:$4 sm:$0xff]   ;;  %v3767_v28 = vld [vmem:[#allocation18 + $0x44] ss:$16 sps:$4 sm:$0xff]  }
 0x202   :  { %1898 = vmatpush1.bf16.msra.mxu0 %v3663_v21  ;;  %1941 = vmatpush1.bf16.msra.mxu1 %v3714_v29  ;;  %v3770_v21 = vld [vmem:[#allocation18 + $0x4c] ss:$16 sps:$4 sm:$0xff]   ;;  %v3765_v29 = vld [vmem:[#allocation18 + $0x40] ss:$16 sps:$4 sm:$0xff]  }
 0x203   :  { %1899 = vmatprep.subr.bf16.mxu0 %v3668_v30  ;;  %1942 = vmatprep.subr.bf16.mxu1 %v3719_v31  ;;  %v3768_v30 = vld [vmem:[#allocation18 + $0x48] ss:$16 sps:$4 sm:$0xff]   ;;  %v3773_v31 = vld [vmem:[#allocation18 + $0x64] ss:$16 sps:$4 sm:$0xff]  }
 0x206   :  { %1900 = vmatpush1.bf16.msra.mxu0 %v3666_v32  ;;  %1943 = vmatpush1.bf16.msra.mxu1 %v3717_v33  ;;  %v3776_v32 = vld [vmem:[#allocation18 + $0x6c] ss:$16 sps:$4 sm:$0xff]   ;;  %v3771_v33 = vld [vmem:[#allocation18 + $0x60] ss:$16 sps:$4 sm:$0xff]  }
 0x207   :  { %1901 = vmatprep.subr.bf16.mxu0 %v3671_v34  ;;  %1944 = vmatprep.subr.bf16.mxu1 %v3722_v35  ;;  %v3774_v34 = vld [vmem:[#allocation18 + $0x68] ss:$16 sps:$4 sm:$0xff]   ;;  %v3779_v35 = vld [vmem:[#allocation18 + $0x84] ss:$16 sps:$4 sm:$0xff]  }
 0x20a   :  { %1902 = vmatpush1.bf16.msra.mxu0 %v3669_v36  ;;  %1945 = vmatpush1.bf16.msra.mxu1 %v3720_v37  ;;  %v3782_v36 = vld [vmem:[#allocation18 + $0x8c] ss:$16 sps:$4 sm:$0xff]   ;;  %v3777_v37 = vld [vmem:[#allocation18 + $0x80] ss:$16 sps:$4 sm:$0xff]  }
 0x20b   :  { %1903 = vmatprep.subr.bf16.mxu0 %v3674_v39  ;;  %1946 = vmatprep.subr.bf16.mxu1 %v3725_v41  ;;  %v3780_v39 = vld [vmem:[#allocation18 + $0x88] ss:$16 sps:$4 sm:$0xff]   ;;  %v3785_v41 = vld [vmem:[#allocation18 + $0xa4] ss:$16 sps:$4 sm:$0xff]  }
 0x20e   :  { %1904 = vmatpush1.bf16.msra.mxu0 %v3672_v42  ;;  %1947 = vmatpush1.bf16.msra.mxu1 %v3723_v43  ;;  %v3788_v42 = vld [vmem:[#allocation18 + $0xac] ss:$16 sps:$4 sm:$0xff]   ;;  %v3783_v43 = vld [vmem:[#allocation18 + $0xa0] ss:$16 sps:$4 sm:$0xff]  }
 0x20f   :  { %1905 = vmatprep.subr.bf16.mxu0 %v3677_v44  ;;  %1948 = vmatprep.subr.bf16.mxu1 %v3728_v45  ;;  %v3786_v44 = vld [vmem:[#allocation18 + $0xa8] ss:$16 sps:$4 sm:$0xff]   ;;  %v3791_v45 = vld [vmem:[#allocation18 + $0xc4] ss:$16 sps:$4 sm:$0xff]  }
 0x212   :  { %1906 = vmatpush1.bf16.msra.mxu0 %v3675_v46  ;;  %1949 = vmatpush1.bf16.msra.mxu1 %v3726_v47  ;;  %v3794_v46 = vld [vmem:[#allocation18 + $0xcc] ss:$16 sps:$4 sm:$0xff]   ;;  %v3789_v47 = vld [vmem:[#allocation18 + $0xc0] ss:$16 sps:$4 sm:$0xff]  }
 0x213   :  { %1907 = vmatprep.subr.bf16.mxu0 %v3680_v48  ;;  %1950 = vmatprep.subr.bf16.mxu1 %v3731_v49  ;;  %v3792_v48 = vld [vmem:[#allocation18 + $0xc8] ss:$16 sps:$4 sm:$0xff]   ;;  %v3797_v49 = vld [vmem:[#allocation18 + $0xe4] ss:$16 sps:$4 sm:$0xff]  }
 0x216   :  { %1908 = vmatpush1.bf16.msra.mxu0 %v3678_v50  ;;  %1951 = vmatpush1.bf16.msra.mxu1 %v3729_v51  ;;  %v3800_v50 = vld [vmem:[#allocation18 + $0xec] ss:$16 sps:$4 sm:$0xff]   ;;  %v3795_v51 = vld [vmem:[#allocation18 + $0xe0] ss:$16 sps:$4 sm:$0xff]  }
 0x217   :  { %1909 = vmatprep.subr.bf16.mxu0 %v3683_v52  ;;  %1952 = vmatprep.subr.bf16.mxu1 %v3734_v54  ;;  %v3798_v52 = vld [vmem:[#allocation18 + $0xe8] ss:$16 sps:$4 sm:$0xff]   ;;  %v3803_v54 = vld [vmem:[#allocation18 + $0x104] ss:$16 sps:$4 sm:$0xff]  }
 0x21a   :  { %1910 = vmatpush1.bf16.msra.mxu0 %v3681_v55  ;;  %1953 = vmatpush1.bf16.msra.mxu1 %v3732_v57  ;;  %v3806_v55 = vld [vmem:[#allocation18 + $0x10c] ss:$16 sps:$4 sm:$0xff]   ;;  %v3801_v57 = vld [vmem:[#allocation18 + $0x100] ss:$16 sps:$4 sm:$0xff]  }
 0x21b   :  { %1911 = vmatprep.subr.bf16.mxu0 %v3686_v58  ;;  %1954 = vmatprep.subr.bf16.mxu1 %v3737_v59  ;;  %v3804_v58 = vld [vmem:[#allocation18 + $0x108] ss:$16 sps:$4 sm:$0xff]   ;;  %v3809_v59 = vld [vmem:[#allocation18 + $0x124] ss:$16 sps:$4 sm:$0xff]  }
 0x21e   :  { %1912 = vmatpush1.bf16.msra.mxu0 %v3684_v60  ;;  %1955 = vmatpush1.bf16.msra.mxu1 %v3735_v61  ;;  %v3812_v60 = vld [vmem:[#allocation18 + $0x12c] ss:$16 sps:$4 sm:$0xff]   ;;  %v3807_v61 = vld [vmem:[#allocation18 + $0x120] ss:$16 sps:$4 sm:$0xff]  }
 0x21f   :  { %1913 = vmatprep.subr.bf16.mxu0 %v3689_v62  ;;  %1956 = vmatprep.subr.bf16.mxu1 %v3740_v63  ;;  %v3810_v62 = vld [vmem:[#allocation18 + $0x128] ss:$16 sps:$4 sm:$0xff]   ;;  %v3815_v63 = vld [vmem:[#allocation18 + $0x144] ss:$16 sps:$4 sm:$0xff]  }
 0x222   :  { %1914 = vmatpush1.bf16.msra.mxu0 %v3687_v0  ;;  %1957 = vmatpush1.bf16.msra.mxu1 %v3738_v1  ;;  %v3818_v0 = vld [vmem:[#allocation18 + $0x14c] ss:$16 sps:$4 sm:$0xff]   ;;  %v3813_v1 = vld [vmem:[#allocation18 + $0x140] ss:$16 sps:$4 sm:$0xff]  }
 0x223   :  { %1915 = vmatprep.subr.bf16.mxu0 %v3692_v2  ;;  %1958 = vmatprep.subr.bf16.mxu1 %v3743_v3  ;;  %v3816_v2 = vld [vmem:[#allocation18 + $0x148] ss:$16 sps:$4 sm:$0xff]   ;;  %v3821_v3 = vld [vmem:[#allocation18 + $0x164] ss:$16 sps:$4 sm:$0xff]  }
 0x226   :  { %1916 = vmatpush1.bf16.msra.mxu0 %v3690_v4  ;;  %1959 = vmatpush1.bf16.msra.mxu1 %v3741_v5  ;;  %v3824_v4 = vld [vmem:[#allocation18 + $0x16c] ss:$16 sps:$4 sm:$0xff]   ;;  %v3819_v5 = vld [vmem:[#allocation18 + $0x160] ss:$16 sps:$4 sm:$0xff]  }
 0x227   :  { %1917 = vmatprep.subr.bf16.mxu0 %v3695_v6  ;;  %1960 = vmatprep.subr.bf16.mxu1 %v3746_v7  ;;  %v3822_v6 = vld [vmem:[#allocation18 + $0x168] ss:$16 sps:$4 sm:$0xff]   ;;  %v3827_v7 = vld [vmem:[#allocation18 + $0x184] ss:$16 sps:$4 sm:$0xff]  }
 0x22a   :  { %1918 = vmatpush1.bf16.msra.mxu0 %v3693_v8  ;;  %1961 = vmatpush1.bf16.msra.mxu1 %v3744_v9  ;;  %v3830_v8 = vld [vmem:[#allocation18 + $0x18c] ss:$16 sps:$4 sm:$0xff]   ;;  %v3825_v9 = vld [vmem:[#allocation18 + $0x180] ss:$16 sps:$4 sm:$0xff]  }
 0x22b   :  { %1919 = vmatprep.subr.bf16.mxu0 %v3698_v10  ;;  %1962 = vmatprep.subr.bf16.mxu1 %v3749_v11  ;;  %v3828_v10 = vld [vmem:[#allocation18 + $0x188] ss:$16 sps:$4 sm:$0xff]   ;;  %v3833_v11 = vld [vmem:[#allocation18 + $0x1a4] ss:$16 sps:$4 sm:$0xff]  }
 0x22e   :  { %1920 = vmatpush1.bf16.msra.mxu0 %v3696_v12  ;;  %1963 = vmatpush1.bf16.msra.mxu1 %v3747_v13  ;;  %v3836_v12 = vld [vmem:[#allocation18 + $0x1ac] ss:$16 sps:$4 sm:$0xff]   ;;  %v3831_v13 = vld [vmem:[#allocation18 + $0x1a0] ss:$16 sps:$4 sm:$0xff]  }
 0x22f   :  { %1921 = vmatprep.subr.bf16.mxu0 %v3701_v14  ;;  %1964 = vmatprep.subr.bf16.mxu1 %v3752_v15  ;;  %v3834_v14 = vld [vmem:[#allocation18 + $0x1a8] ss:$16 sps:$4 sm:$0xff]   ;;  %v3839_v15 = vld [vmem:[#allocation18 + $0x1c4] ss:$16 sps:$4 sm:$0xff]  }
 0x232   :  { %1922 = vmatpush1.bf16.msra.mxu0 %v3699_v16  ;;  %1965 = vmatpush1.bf16.msra.mxu1 %v3750_v17  ;;  %v3842_v16 = vld [vmem:[#allocation18 + $0x1cc] ss:$16 sps:$4 sm:$0xff]   ;;  %v3837_v17 = vld [vmem:[#allocation18 + $0x1c0] ss:$16 sps:$4 sm:$0xff]  }
 0x233   :  { %2787 = vmatprep.subr.bf16.mxu0 %v3755_v20  ;;  %2873 = vmatprep.subr.bf16.mxu1 %v3758_v23  ;;  %v3848_v20 = vld [vmem:[#allocation18 + $0x1ec] ss:$16 sps:$4 sm:$0xff]   ;;  %v3846_v23 = vld [vmem:[#allocation18 + $0x1e8] ss:$16 sps:$4 sm:$0xff]  }
 0x235   :  { %1924 = vmatmul.mubr.bf16.vlgmr.msra.gmra.mrb[8].mxu0 %v3705_v18  ;;  %1967 = vmatmul.mubr.bf16.vlgmr.msra.gmra.mrb[8].mxu1 %v3705_v18  ;;  %v3840_v18 = vld [vmem:[#allocation18 + $0x1c8] ss:$16 sps:$4 sm:$0xff]  }
 0x236   :  { %2788 = vmatpush1.bf16.msra.mxu0 %v3753_v19  ;;  %2874 = vmatpush1.bf16.msra.mxu1 %v3756_v22  ;;  %v3845_v19 = vld [vmem:[#allocation18 + $0x1e4] ss:$16 sps:$4 sm:$0xff]   ;;  %v3843_v22 = vld [vmem:[#allocation18 + $0x1e0] ss:$16 sps:$4 sm:$0xff]  }
 0x237   :  { %2789 = vmatprep.subr.bf16.mxu0 %v3761_v24  ;;  %2875 = vmatprep.subr.bf16.mxu1 %v3764_v25  ;;  %v3851_v24 = vld [vmem:[#allocation18 + $0x204] ss:$16 sps:$4 sm:$0xff]   ;;  %v3854_v25 = vld [vmem:[#allocation18 + $0x20c] ss:$16 sps:$4 sm:$0xff]  }
 0x23a   :  { %2790 = vmatpush1.bf16.msra.mxu0 %v3759_v26  ;;  %2876 = vmatpush1.bf16.msra.mxu1 %v3762_v27  ;;  %v628_v26 = vld [vmem:[#allocation12] sm:$0xf] }
 0x23b   :  { %2791 = vmatprep.subr.bf16.mxu0 %v3767_v28  ;;  %2877 = vmatprep.subr.bf16.mxu1 %v3770_v21  ;;  %v633_v27 = vrot.slane %v628_v26, %v4438_v38  ;;  %v641_v28 = vrot.slane %v628_v26, %v4444_v53  ;;  %v637_v21 = vrot.slane %v628_v26, %v4440_v40 }
 0x23e   :  { %2792 = vmatpush1.bf16.msra.mxu0 %v3765_v29  ;;  %2878 = vmatpush1.bf16.msra.mxu1 %v3768_v30  ;;  %v645_v29 = vrot.slane %v628_v26, %v4446_v56  ;;  %v3863_v26 = vld [vmem:[#allocation18 + $0x244] ss:$16 sps:$4 sm:$0xff]  }
 0x23f   :  { %2793 = vmatprep.subr.bf16.mxu0 %v3773_v31  ;;  %2879 = vmatprep.subr.bf16.mxu1 %v3776_v32 }
 0x242   :  { %2794 = vmatpush1.bf16.msra.mxu0 %v3771_v33  ;;  %2880 = vmatpush1.bf16.msra.mxu1 %v3774_v34 }
 0x243   :  { %2795 = vmatprep.subr.bf16.mxu0 %v3779_v35  ;;  %2881 = vmatprep.subr.bf16.mxu1 %v3782_v36 }
 0x246   :  { %2796 = vmatpush1.bf16.msra.mxu0 %v3777_v37  ;;  %2882 = vmatpush1.bf16.msra.mxu1 %v3780_v39 }
 0x247   :  { %2797 = vmatprep.subr.bf16.mxu0 %v3785_v41  ;;  %2883 = vmatprep.subr.bf16.mxu1 %v3788_v42 }
 0x24a   :  { %2798 = vmatpush1.bf16.msra.mxu0 %v3783_v43  ;;  %2884 = vmatpush1.bf16.msra.mxu1 %v3786_v44 }
 0x24b   :  { %2799 = vmatprep.subr.bf16.mxu0 %v3791_v45  ;;  %2885 = vmatprep.subr.bf16.mxu1 %v3794_v46 }
 0x24e   :  { %2800 = vmatpush1.bf16.msra.mxu0 %v3789_v47  ;;  %2886 = vmatpush1.bf16.msra.mxu1 %v3792_v48  ;;  %v1539_v48 = vld [vmem:[#allocation16] sm:$0xf] }
 0x24f   :  { %2801 = vmatprep.subr.bf16.mxu0 %v3797_v49  ;;  %2887 = vmatprep.subr.bf16.mxu1 %v3800_v50  ;;  %v1544_v49 = vrot.slane %v1539_v48, %v4438_v38  ;;  %v1552_v50 = vrot.slane %v1539_v48, %v4444_v53 }
 0x252   :  { %2802 = vmatpush1.bf16.msra.mxu0 %v3795_v51  ;;  %2888 = vmatpush1.bf16.msra.mxu1 %v3798_v52  ;;  %v1548_v51 = vrot.slane %v1539_v48, %v4440_v40  ;;  %v1556_v52 = vrot.slane %v1539_v48, %v4446_v56  ;;  %v3896_v48 = vld [vmem:[#allocation18 + $0x2ec] ss:$16 sps:$4 sm:$0xff]  }
 0x253   :  { %2803 = vmatprep.subr.bf16.mxu0 %v3803_v54  ;;  %2889 = vmatprep.subr.bf16.mxu1 %v3806_v55 }
 0x256   :  { %2804 = vmatpush1.bf16.msra.mxu0 %v3801_v57  ;;  %2890 = vmatpush1.bf16.msra.mxu1 %v3804_v58 }
 0x257   :  { %2805 = vmatprep.subr.bf16.mxu0 %v3809_v59  ;;  %2891 = vmatprep.subr.bf16.mxu1 %v3812_v60 }
 0x25a   :  { %2806 = vmatpush1.bf16.msra.mxu0 %v3807_v61  ;;  %2892 = vmatpush1.bf16.msra.mxu1 %v3810_v62 }
 0x25b   :  { %2807 = vmatprep.subr.bf16.mxu0 %v3815_v63  ;;  %2893 = vmatprep.subr.bf16.mxu1 %v3818_v0 }
 0x25e   :  { %2808 = vmatpush1.bf16.msra.mxu0 %v3813_v1  ;;  %2894 = vmatpush1.bf16.msra.mxu1 %v3816_v2 }
 0x25f   :  { %2809 = vmatprep.subr.bf16.mxu0 %v3821_v3  ;;  %2895 = vmatprep.subr.bf16.mxu1 %v3824_v4 }
 0x262   :  { %2810 = vmatpush1.bf16.msra.mxu0 %v3819_v5  ;;  %2896 = vmatpush1.bf16.msra.mxu1 %v3822_v6 }
 0x263   :  { %2811 = vmatprep.subr.bf16.mxu0 %v3827_v7  ;;  %2897 = vmatprep.subr.bf16.mxu1 %v3830_v8 }
 0x266   :  { %2812 = vmatpush1.bf16.msra.mxu0 %v3825_v9  ;;  %2898 = vmatpush1.bf16.msra.mxu1 %v3828_v10 }
 0x267   :  { %2813 = vmatprep.subr.bf16.mxu0 %v3833_v11  ;;  %2899 = vmatprep.subr.bf16.mxu1 %v3836_v12 }
 0x26a   :  { %2814 = vmatpush1.bf16.msra.mxu0 %v3831_v13  ;;  %2900 = vmatpush1.bf16.msra.mxu1 %v3834_v14 }
 0x26b   :  { %2815 = vmatprep.subr.bf16.mxu0 %v3839_v15  ;;  %2901 = vmatprep.subr.bf16.mxu1 %v3842_v16 }
 0x26e   :  { %2816 = vmatpush1.bf16.msra.mxu0 %v3837_v17  ;;  %2902 = vmatpush1.bf16.msra.mxu1 %v3840_v18  ;;  %v3849_v18 = vld [vmem:[#allocation18 + $0x200] ss:$16 sps:$4 sm:$0xff]  }
 0x26f   :  { %2817 = vmatprep.subr.bf16.mxu0 %v3845_v19  ;;  %2903 = vmatprep.subr.bf16.mxu1 %v3848_v20  ;;  %v3852_v19 = vld [vmem:[#allocation18 + $0x208] ss:$16 sps:$4 sm:$0xff]  }
 0x272   :  { %2818 = vmatpush1.bf16.msra.mxu0 %v3843_v22  ;;  %2904 = vmatpush1.bf16.msra.mxu1 %v3846_v23  ;;  %v3857_v22 = vld [vmem:[#allocation18 + $0x224] ss:$16 sps:$4 sm:$0xff]   ;;  %v3860_v23 = vld [vmem:[#allocation18 + $0x22c] ss:$16 sps:$4 sm:$0xff]  }
 0x273   :  { %2830 = vmatprep.subr.bf16.mxu0 %v3851_v24  ;;  %2916 = vmatprep.subr.bf16.mxu1 %v3854_v25  ;;  %v3855_v24 = vld [vmem:[#allocation18 + $0x220] ss:$16 sps:$4 sm:$0xff]   ;;  %v3858_v25 = vld [vmem:[#allocation18 + $0x228] ss:$16 sps:$4 sm:$0xff]  }
 0x2c8   :  { %v1367_v30 = vpop.f32.mrb[4].mxu0  ;;  %v1453_v31 = vpop.f32.mrb[4].mxu1 }
 0x2c9   :  { %v3360_v32 = vadd.f32 %v1367_v30, %v633_v27  ;;  %v3364_v33 = vadd.f32 %v1453_v31, %v641_v28  ;;  %v1369_v34 = vpop.f32.mrb[5].mxu0  ;;  %v1455_v35 = vpop.f32.mrb[5].mxu1  ;;  %v3872_v30 = vld [vmem:[#allocation18 + $0x26c] ss:$16 sps:$4 sm:$0xff]   ;;  %v3867_v31 = vld [vmem:[#allocation18 + $0x260] ss:$16 sps:$4 sm:$0xff]  }
 0x2ca   :  { %v3361_v36 = vadd.f32 %v1369_v34, %v637_v21  ;;  %v3365_v37 = vadd.f32 %v1455_v35, %v645_v29  ;;  %v1371_v39 = vpop.f32.mrb[6].mxu0  ;;  %v1457_v41 = vpop.f32.mrb[6].mxu1  ;;  %v3878_v34 = vld [vmem:[#allocation18 + $0x28c] ss:$16 sps:$4 sm:$0xff]   ;;  %v3873_v35 = vld [vmem:[#allocation18 + $0x280] ss:$16 sps:$4 sm:$0xff]  }
 0x2cb   :  { %1462 = vst [vmem:[#allocation21] sm:$0xff] %v3360_v32  ;;  %1464 = vst [vmem:[#allocation21 + $0x10] sm:$0xff] %v3364_v33  ;;  %v3362_v42 = vadd.f32 %v1371_v39, %v633_v27  ;;  %v3366_v43 = vadd.f32 %v1457_v41, %v641_v28  ;;  %v1373_v44 = vpop.f32.mrb[7].mxu0  ;;  %v1459_v45 = vpop.f32.mrb[7].mxu1  ;;  %v3866_v27 = vld [vmem:[#allocation18 + $0x24c] ss:$16 sps:$4 sm:$0xff]  }
 0x2cc   :  { %1463 = vst [vmem:[#allocation21 + $0x8] sm:$0xff] %v3361_v36  ;;  %1465 = vst [vmem:[#allocation21 + $0x18] sm:$0xff] %v3365_v37  ;;  %v3363_v46 = vadd.f32 %v1373_v44, %v637_v21  ;;  %v3367_v47 = vadd.f32 %v1459_v45, %v645_v29  ;;  %v3861_v28 = vld [vmem:[#allocation18 + $0x240] ss:$16 sps:$4 sm:$0xff]   ;;  %v3864_v21 = vld [vmem:[#allocation18 + $0x248] ss:$16 sps:$4 sm:$0xff]  }
 0x2cd   :  { %1466 = vst [vmem:[#allocation21 + $0x20] sm:$0xff] %v3362_v42  ;;  %1468 = vst [vmem:[#allocation21 + $0x30] sm:$0xff] %v3366_v43  ;;  %v3869_v29 = vld [vmem:[#allocation18 + $0x264] ss:$16 sps:$4 sm:$0xff]   ;;  %v3870_v32 = vld [vmem:[#allocation18 + $0x268] ss:$16 sps:$4 sm:$0xff]  }
 0x2ce   :  { %1467 = vst [vmem:[#allocation21 + $0x28] sm:$0xff] %v3363_v46  ;;  %1469 = vst [vmem:[#allocation21 + $0x38] sm:$0xff] %v3367_v47  ;;  %v3875_v33 = vld [vmem:[#allocation18 + $0x284] ss:$16 sps:$4 sm:$0xff]   ;;  %v3876_v36 = vld [vmem:[#allocation18 + $0x288] ss:$16 sps:$4 sm:$0xff]  }
 0x2cf   :  { %v3881_v37 = vld [vmem:[#allocation18 + $0x2a4] ss:$16 sps:$4 sm:$0xff]   ;;  %v3884_v39 = vld [vmem:[#allocation18 + $0x2ac] ss:$16 sps:$4 sm:$0xff]   ;;  %v3879_v41 = vld [vmem:[#allocation18 + $0x2a0] ss:$16 sps:$4 sm:$0xff]  }
 0x2d0   :  { %v3882_v42 = vld [vmem:[#allocation18 + $0x2a8] ss:$16 sps:$4 sm:$0xff]   ;;  %v3887_v43 = vld [vmem:[#allocation18 + $0x2c4] ss:$16 sps:$4 sm:$0xff]   ;;  %v3890_v44 = vld [vmem:[#allocation18 + $0x2cc] ss:$16 sps:$4 sm:$0xff]  }
 0x2d1   :  { %v3885_v45 = vld [vmem:[#allocation18 + $0x2c0] ss:$16 sps:$4 sm:$0xff]   ;;  %v3888_v46 = vld [vmem:[#allocation18 + $0x2c8] ss:$16 sps:$4 sm:$0xff]   ;;  %v3893_v47 = vld [vmem:[#allocation18 + $0x2e4] ss:$16 sps:$4 sm:$0xff]  }
 0x308   :  { %v1925_v54 = vpop.f32.mrb[8].mxu0  ;;  %v1968_v55 = vpop.f32.mrb[8].mxu1 }
 0x309   :  { %v1926_v57 = vadd.f32 %v1925_v54, %v1544_v49  ;;  %v1927_v58 = vpop.f32.mrb[9].mxu0  ;;  %v1969_v59 = vadd.f32 %v1968_v55, %v1552_v50  ;;  %v1970_v60 = vpop.f32.mrb[9].mxu1  ;;  %v3897_v54 = vld [vmem:[#allocation18 + $0x300] ss:$16 sps:$4 sm:$0xff]   ;;  %v3900_v55 = vld [vmem:[#allocation18 + $0x308] ss:$16 sps:$4 sm:$0xff]  }
 0x30a   :  { %v1928_v61 = vadd.f32 %v1927_v58, %v1548_v51  ;;  %v1929_v62 = vpop.f32.mrb[10].mxu0  ;;  %v1971_v63 = vadd.f32 %v1970_v60, %v1556_v52  ;;  %v1972_v0 = vpop.f32.mrb[10].mxu1  ;;  %v3908_v58 = vld [vmem:[#allocation18 + $0x32c] ss:$16 sps:$4 sm:$0xff]   ;;  %v3906_v60 = vld [vmem:[#allocation18 + $0x328] ss:$16 sps:$4 sm:$0xff]  }
 0x30b   :  { %v1930_v1 = vadd.f32 %v1929_v62, %v1544_v49  ;;  %v1931_v2 = vpop.f32.mrb[11].mxu0  ;;  %v1979_v3 = vmax.f32 %v1969_v59, 0.0  ;;  %v1973_v4 = vadd.f32 %v1972_v0, %v1552_v50  ;;  %v1974_v5 = vpop.f32.mrb[11].mxu1  ;;  %v1977_v9 = vmax.f32 %v1926_v57, 0.0  ;;  %v3891_v49 = vld [vmem:[#allocation18 + $0x2e0] ss:$16 sps:$4 sm:$0xff]  }
 0x30c   :  { %v1932_v6 = vadd.f32 %v1931_v2, %v1548_v51  ;;  %v1980_v7 = vmax.f32 %v1971_v63, 0.0  ;;  %v1975_v8 = vadd.f32 %v1974_v5, %v1556_v52  ;;  %v1978_v12 = vmax.f32 %v1928_v61, 0.0  ;;  %v3894_v50 = vld [vmem:[#allocation18 + $0x2e8] ss:$16 sps:$4 sm:$0xff]   ;;  %v3899_v51 = vld [vmem:[#allocation18 + $0x304] ss:$16 sps:$4 sm:$0xff]  }
 0x30d   :  { %v1981_v10 = vmax.f32 %v1930_v1, 0.0  ;;  %v1983_v11 = vmax.f32 %v1973_v4, 0.0  ;;  %v3902_v52 = vld [vmem:[#allocation18 + $0x30c] ss:$16 sps:$4 sm:$0xff]   ;;  %v3905_v57 = vld [vmem:[#allocation18 + $0x324] ss:$16 sps:$4 sm:$0xff]  }
 0x30e   :  { %v1982_v13 = vmax.f32 %v1932_v6, 0.0  ;;  %v1984_v14 = vmax.f32 %v1975_v8, 0.0  ;;  %v3903_v59 = vld [vmem:[#allocation18 + $0x320] ss:$16 sps:$4 sm:$0xff]   ;;  %v3911_v61 = vld [vmem:[#allocation18 + $0x344] ss:$16 sps:$4 sm:$0xff]  }
 0x30f   :  { %v1985_v15 = vpack.c.bf16 %v1981_v10, %v1977_v9  ;;  %v4462_v16 = vpack.c.bf16 %v1983_v11, %v1979_v3  ;;  %v3914_v62 = vld [vmem:[#allocation18 + $0x34c] ss:$16 sps:$4 sm:$0xff]   ;;  %v3909_v63 = vld [vmem:[#allocation18 + $0x340] ss:$16 sps:$4 sm:$0xff]   ;;  %v3912_v0 = vld [vmem:[#allocation18 + $0x348] ss:$16 sps:$4 sm:$0xff]  }
 0x310   :  { %v1986_v17 = vpack.c.bf16 %v1982_v13, %v1978_v12  ;;  %v1988_v20 = vpack.c.bf16 %v1984_v14, %v1980_v7  ;;  %v3917_v1 = vld [vmem:[#allocation18 + $0x364] ss:$16 sps:$4 sm:$0xff]   ;;  %v3920_v2 = vld [vmem:[#allocation18 + $0x36c] ss:$16 sps:$4 sm:$0xff]   ;;  %v3915_v3 = vld [vmem:[#allocation18 + $0x360] ss:$16 sps:$4 sm:$0xff]  }
 0x311   :  { %v3918_v4 = vld [vmem:[#allocation18 + $0x368] ss:$16 sps:$4 sm:$0xff]   ;;  %v3923_v5 = vld [vmem:[#allocation18 + $0x384] ss:$16 sps:$4 sm:$0xff]   ;;  %v3926_v6 = vld [vmem:[#allocation18 + $0x38c] ss:$16 sps:$4 sm:$0xff]  }
 0x312   :  { %2819 = vmatprep.mubr.bf16.mxu0 %v1986_v17  ;;  %2905 = vmatprep.mubr.bf16.mxu1 %v1986_v17  ;;  %v3921_v7 = vld [vmem:[#allocation18 + $0x380] ss:$16 sps:$4 sm:$0xff]   ;;  %v3924_v8 = vld [vmem:[#allocation18 + $0x388] ss:$16 sps:$4 sm:$0xff]   ;;  %v3929_v9 = vld [vmem:[#allocation18 + $0x3a4] ss:$16 sps:$4 sm:$0xff]  }
 0x313   :  { %2820 = vmatmul.mubr.bf16.vlgmr.msra.gmra.mrb[12].mxu0 %v1985_v15  ;;  %2906 = vmatmul.mubr.bf16.vlgmr.msra.gmra.mrb[12].mxu1 %v1985_v15  ;;  %v3932_v10 = vld [vmem:[#allocation18 + $0x3ac] ss:$16 sps:$4 sm:$0xff]   ;;  %v3927_v11 = vld [vmem:[#allocation18 + $0x3a0] ss:$16 sps:$4 sm:$0xff]   ;;  %v3930_v12 = vld [vmem:[#allocation18 + $0x3a8] ss:$16 sps:$4 sm:$0xff]  }
 0x314   :  { %2831 = vmatpush1.bf16.msra.mxu0 %v3849_v18  ;;  %2917 = vmatpush1.bf16.msra.mxu1 %v3852_v19  ;;  %v3935_v13 = vld [vmem:[#allocation18 + $0x3c4] ss:$16 sps:$4 sm:$0xff]   ;;  %v3938_v14 = vld [vmem:[#allocation18 + $0x3cc] ss:$16 sps:$4 sm:$0xff]   ;;  %v3933_v15 = vld [vmem:[#allocation18 + $0x3c0] ss:$16 sps:$4 sm:$0xff]  }
 0x315   :  { %2832 = vmatprep.subr.bf16.mxu0 %v3857_v22  ;;  %2918 = vmatprep.subr.bf16.mxu1 %v3860_v23  ;;  %v3936_v17 = vld [vmem:[#allocation18 + $0x3c8] ss:$16 sps:$4 sm:$0xff]   ;;  %v3941_v18 = vld [vmem:[#allocation18 + $0x3e4] ss:$16 sps:$4 sm:$0xff]   ;;  %v3944_v19 = vld [vmem:[#allocation18 + $0x3ec] ss:$16 sps:$4 sm:$0xff]  }
 0x316   :  { %2862 = vmatprep.mubr.bf16.mxu0 %v1988_v20  ;;  %2948 = vmatprep.mubr.bf16.mxu1 %v1988_v20  ;;  %v3939_v20 = vld [vmem:[#allocation18 + $0x3e0] ss:$16 sps:$4 sm:$0xff]   ;;  %v3942_v22 = vld [vmem:[#allocation18 + $0x3e8] ss:$16 sps:$4 sm:$0xff]  }
 0x318   :  { %2833 = vmatpush1.bf16.msra.mxu0 %v3855_v24  ;;  %2919 = vmatpush1.bf16.msra.mxu1 %v3858_v25 }
 0x319   :  { %2834 = vmatprep.subr.bf16.mxu0 %v3863_v26  ;;  %2920 = vmatprep.subr.bf16.mxu1 %v3866_v27 }
 0x31c   :  { %2835 = vmatpush1.bf16.msra.mxu0 %v3861_v28  ;;  %2921 = vmatpush1.bf16.msra.mxu1 %v3864_v21 }
 0x31d   :  { %2836 = vmatprep.subr.bf16.mxu0 %v3869_v29  ;;  %2922 = vmatprep.subr.bf16.mxu1 %v3872_v30 }
 0x320   :  { %2837 = vmatpush1.bf16.msra.mxu0 %v3867_v31  ;;  %2923 = vmatpush1.bf16.msra.mxu1 %v3870_v32 }
 0x321   :  { %2838 = vmatprep.subr.bf16.mxu0 %v3875_v33  ;;  %2924 = vmatprep.subr.bf16.mxu1 %v3878_v34 }
 0x324   :  { %2839 = vmatpush1.bf16.msra.mxu0 %v3873_v35  ;;  %2925 = vmatpush1.bf16.msra.mxu1 %v3876_v36 }
 0x325   :  { %2840 = vmatprep.subr.bf16.mxu0 %v3881_v37  ;;  %2926 = vmatprep.subr.bf16.mxu1 %v3884_v39 }
 0x328   :  { %2841 = vmatpush1.bf16.msra.mxu0 %v3879_v41  ;;  %2927 = vmatpush1.bf16.msra.mxu1 %v3882_v42 }
 0x329   :  { %2842 = vmatprep.subr.bf16.mxu0 %v3887_v43  ;;  %2928 = vmatprep.subr.bf16.mxu1 %v3890_v44 }
 0x32c   :  { %2843 = vmatpush1.bf16.msra.mxu0 %v3885_v45  ;;  %2929 = vmatpush1.bf16.msra.mxu1 %v3888_v46 }
 0x32d   :  { %2844 = vmatprep.subr.bf16.mxu0 %v3893_v47  ;;  %2930 = vmatprep.subr.bf16.mxu1 %v3896_v48 }
 0x330   :  { %2845 = vmatpush1.bf16.msra.mxu0 %v3891_v49  ;;  %2931 = vmatpush1.bf16.msra.mxu1 %v3894_v50 }
 0x331   :  { %2846 = vmatprep.subr.bf16.mxu0 %v3899_v51  ;;  %2932 = vmatprep.subr.bf16.mxu1 %v3902_v52 }
 0x334   :  { %2847 = vmatpush1.bf16.msra.mxu0 %v3897_v54  ;;  %2933 = vmatpush1.bf16.msra.mxu1 %v3900_v55 }
 0x335   :  { %2848 = vmatprep.subr.bf16.mxu0 %v3905_v57  ;;  %2934 = vmatprep.subr.bf16.mxu1 %v3908_v58 }
 0x338   :  { %2849 = vmatpush1.bf16.msra.mxu0 %v3903_v59  ;;  %2935 = vmatpush1.bf16.msra.mxu1 %v3906_v60 }
 0x339   :  { %2850 = vmatprep.subr.bf16.mxu0 %v3911_v61  ;;  %2936 = vmatprep.subr.bf16.mxu1 %v3914_v62 }
 0x33c   :  { %2851 = vmatpush1.bf16.msra.mxu0 %v3909_v63  ;;  %2937 = vmatpush1.bf16.msra.mxu1 %v3912_v0 }
 0x33d   :  { %2852 = vmatprep.subr.bf16.mxu0 %v3917_v1  ;;  %2938 = vmatprep.subr.bf16.mxu1 %v3920_v2 }
 0x340   :  { %2853 = vmatpush1.bf16.msra.mxu0 %v3915_v3  ;;  %2939 = vmatpush1.bf16.msra.mxu1 %v3918_v4 }
 0x341   :  { %2854 = vmatprep.subr.bf16.mxu0 %v3923_v5  ;;  %2940 = vmatprep.subr.bf16.mxu1 %v3926_v6 }
 0x344   :  { %2855 = vmatpush1.bf16.msra.mxu0 %v3921_v7  ;;  %2941 = vmatpush1.bf16.msra.mxu1 %v3924_v8 }
 0x345   :  { %2856 = vmatprep.subr.bf16.mxu0 %v3929_v9  ;;  %2942 = vmatprep.subr.bf16.mxu1 %v3932_v10 }
 0x348   :  { %2857 = vmatpush1.bf16.msra.mxu0 %v3927_v11  ;;  %2943 = vmatpush1.bf16.msra.mxu1 %v3930_v12 }
 0x349   :  { %2858 = vmatprep.subr.bf16.mxu0 %v3935_v13  ;;  %2944 = vmatprep.subr.bf16.mxu1 %v3938_v14 }
 0x34c   :  { %2859 = vmatpush1.bf16.msra.mxu0 %v3933_v15  ;;  %2945 = vmatpush1.bf16.msra.mxu1 %v3936_v17 }
 0x34d   :  { %2860 = vmatprep.subr.bf16.mxu0 %v3941_v18  ;;  %2946 = vmatprep.subr.bf16.mxu1 %v3944_v19 }
 0x350   :  { %2861 = vmatpush1.bf16.msra.mxu0 %v3939_v20  ;;  %2947 = vmatpush1.bf16.msra.mxu1 %v3942_v22 }
 0x353   :  { %2863 = vmatmul.mubr.bf16.vlgmr.msra.gmra.mrb[12].mxu0 %v4462_v16  ;;  %2949 = vmatmul.mubr.bf16.vlgmr.msra.gmra.mrb[12].mxu1 %v4462_v16 }
 0x354   :  { %4176 = shalt.err (!%p4173_p0)
}
 0x355   :  { %s4177_s30 = scalar_lea.hbm %s4510_s10, 1024 }
 0x356   :  { %p4178_p1 = scmp.ne.s32.totalorder %s4510_s10, %s4177_s30  ;;  %p4181_p2 = scmp.lt.u32.totalorder %s4177_s30, %s4510_s10 }
 0x358   :  { %p4183_p3 = pnand %p4181_p2, %p4178_p1 }
 0x35a   :  { %4186 = shalt.err (!%p4183_p3)
}
 0x35b   :  { %s4243_s23 = smov 512   ;;  %s4244_s7 = smov 32   ;;  %v2125_v16 = vld [vmem:[#allocation19] sm:$0xf] }
 0x35c   :  { %2978 = dma.vmem_to_hbm [thread:$0]  %s2973_s28, 1024, %s4510_s10, [#allocation6], %s4243_s23, %s4243_s23, %s4244_s7   ;;  %v2130_v23 = vrot.slane %v2125_v16, %v4438_v38  ;;  %v2138_v24 = vrot.slane %v2125_v16, %v4444_v53  ;;  %v2134_v25 = vrot.slane %v2125_v16, %v4440_v40  ;;  %v2142_v26 = vrot.slane %v2125_v16, %v4446_v56 }
 0x35d   :  { %s4245_s24 = smov [#allocation22]  }
 0x35e   :  { %s2984_s6 = sshll.u32 %s4245_s24, 4  ;;  %s2985_s6 = int_to_ptr.vmem [resolvable:$true] %s2984_s6 }
 0x35f   :  { %s4187_s10 = scalar_lea.vmem %s2985_s6, 1024  ;;  %p4192_p5 = scmp.lt.s32.totalorder %s2985_s6, %s2985_s6 }
 0x360   :  { %p4188_p4 = scmp.ne.s32.totalorder %s2985_s6, %s4187_s10  ;;  %p4193_p6 = scmp.lt.s32.totalorder %s4187_s10, %s4187_s10 }
 0x362   :  { %p4194_p7 = por %p4193_p6, %p4192_p5 }
 0x364   :  { %p4195_p8 = pnand %p4194_p7, %p4188_p4 }
 0x426   :  { %v2864_v27 = vpop.f32.mrb[12].mxu0  ;;  %v2950_v28 = vpop.f32.mrb[12].mxu1 }
 0x427   :  { %v3368_v21 = vadd.f32 %v2864_v27, %v2130_v23  ;;  %v3372_v29 = vadd.f32 %v2950_v28, %v2138_v24  ;;  %v2866_v30 = vpop.f32.mrb[13].mxu0  ;;  %v2952_v31 = vpop.f32.mrb[13].mxu1 }
 0x428   :  { %v3369_v32 = vadd.f32 %v2866_v30, %v2134_v25  ;;  %v3373_v33 = vadd.f32 %v2952_v31, %v2142_v26  ;;  %v2868_v34 = vpop.f32.mrb[14].mxu0  ;;  %v2954_v35 = vpop.f32.mrb[14].mxu1 }
 0x429   :  { %2959 = vst [vmem:[#allocation22] sm:$0xff] %v3368_v21  ;;  %2961 = vst [vmem:[#allocation22 + $0x10] sm:$0xff] %v3372_v29  ;;  %v3370_v38 = vadd.f32 %v2868_v34, %v2130_v23  ;;  %v3374_v53 = vadd.f32 %v2954_v35, %v2138_v24  ;;  %v2870_v36 = vpop.f32.mrb[15].mxu0  ;;  %v2956_v40 = vpop.f32.mrb[15].mxu1 }
 0x42a   :  { %2960 = vst [vmem:[#allocation22 + $0x8] sm:$0xff] %v3369_v32  ;;  %2962 = vst [vmem:[#allocation22 + $0x18] sm:$0xff] %v3373_v33  ;;  %v3371_v56 = vadd.f32 %v2870_v36, %v2134_v25  ;;  %v3375_v37 = vadd.f32 %v2956_v40, %v2142_v26 }
 0x42b   :  { %2963 = vst [vmem:[#allocation22 + $0x20] sm:$0xff] %v3370_v38  ;;  %2965 = vst [vmem:[#allocation22 + $0x30] sm:$0xff] %v3374_v53 }
 0x42c   :  { %2964 = vst [vmem:[#allocation22 + $0x28] sm:$0xff] %v3371_v56  ;;  %2966 = vst [vmem:[#allocation22 + $0x38] sm:$0xff] %v3375_v37 }
 0x42d   :  { %4198 = shalt.err (!%p4195_p8)
}
 0x42e   :  { %s4199_s26 = scalar_lea.hbm %s4511_s11, 1024 }
 0x42f   :  { %p4200_p9 = scmp.ne.s32.totalorder %s4511_s11, %s4199_s26  ;;  %p4203_p10 = scmp.lt.u32.totalorder %s4199_s26, %s4511_s11 }
 0x431   :  { %p4205_p11 = pnand %p4203_p10, %p4200_p9 }
 0x433   :  { %4208 = shalt.err (!%p4205_p11)
}
 0x434   :  { %2990 = dma.vmem_to_hbm [thread:$0]  %s2985_s6, 1024, %s4511_s11, [#allocation23], %s4243_s23, %s4243_s23, %s4244_s7  }
 0x435   :  { %4221 = dma.done.wait [#allocation6], 1024  }
 0x436   :  { %4222 = vsyncadd [#allocation6], 4294966272 }
 0x437   :  { %4223 = dma.done.wait [#allocation23], 1024  }
 0x438   :  { %4224 = vsyncadd [#allocation23], 4294966272 }
 0x439   :  { %2997 = vsyncpa [#allocation5], 1 }
 0x43a   :  { %2998 = vsyncpa [#allocation8], 1 }
 0x43b   :  { %2999 = vsyncpa [#allocation11], 1 }
 0x43c   :  { %3000 = vsyncpa [#allocation14], 1 }
 0x43d   :  { %3001 = vsyncpa [#allocation17], 1 }
 0x43e   :  { %3002 = vsyncpa [#allocation20], 1 }
 0x43f   :  { %3003 = vsyncpa [#allocation6], 1 }
 0x440   :  { %3004 = vsyncpa [#allocation23], 1 }

</bundles_post_ra>
